<compile_context>
chip_gen: v6e
topology: v6e:2x2x1
jax: 0.10.0
libtpu: 0.0.40
codegen_flags: <defaults>
</compile_context>

<pallas_src>
import functools

import jax
import jax.numpy as jnp
from jax.experimental import pallas as pl
from jax.experimental.pallas import tpu as pltpu

EPS = 1e-5
LANE = 128
SUBLANE_BF16 = 16
_VMEM_CAP_BYTES = 48 * 2**20   # stay well under v7x's 64 MiB physical VMEM


def _round_up(n, m):
    return ((n + m - 1) // m) * m


@functools.lru_cache(maxsize=1)
def _use_bf16_activations():
    """bf16 VPU/EUP exists on v6e/v7x; keep elementwise math f32 elsewhere (v5e)."""
    try:
        kind = jax.devices()[0].device_kind.lower()
    except Exception:
        return False
    return ("v6" in kind) or ("v7" in kind)


# ---------------------------------------------------------------------------
# Kernel: one grid step = one full 4-layer forward on its (minibatch, feat) block.
#   vec_ref rows: 0:g1 1:be1 2:g2 3:be2 4:g3 5:be3 6:b4 7:(pad)
#   Linear biases b1..b3 are dropped: a bias added right before training-mode
#   BatchNorm is exactly cancelled by the mean subtraction.
# ---------------------------------------------------------------------------
def _fc4_kernel(x_ref, w1_ref, w2_ref, w3_ref, w4_ref, vec_ref, o_ref, *, bf16_act):
    act_dt = jnp.bfloat16 if bf16_act else jnp.float32

    def bn(h, row):
        # Training-mode BatchNorm1d (biased variance), single pass over h,
        # folded into per-feature scale/shift so the apply is 2 VALU ops/elem.
        n = h.shape[1]
        gamma = vec_ref[row:row + 1, :n]
        beta = vec_ref[row + 1:row + 2, :n]
        inv_b = 1.0 / h.shape[0]
        mu = jnp.sum(h, axis=0, keepdims=True) * inv_b
        ex2 = jnp.sum(h * h, axis=0, keepdims=True) * inv_b
        var = jnp.maximum(ex2 - mu * mu, 0.0)        # clamp f32 cancellation
        scale = gamma * jax.lax.rsqrt(var + EPS)      # (1, n)
        shift = beta - mu * scale                     # (1, n)
        return h * scale + shift

    x = x_ref[...].astype(jnp.bfloat16)               # cast in VMEM, no extra HBM pass

    # Layer 1: Linear (bias folded into BN) -> BN -> ReLU
    h = jnp.dot(x, w1_ref[...], preferred_element_type=jnp.float32)
    h = jnp.maximum(bn(h, 0).astype(act_dt), 0).astype(jnp.bfloat16)

    # Layer 2: Linear -> BN -> Tanh  (tanh in bf16 on v6e/v7x: EUP-bound portion)
    h = jnp.dot(h, w2_ref[...], preferred_element_type=jnp.float32)
    h = jnp.tanh(bn(h, 2).astype(act_dt)).astype(jnp.bfloat16)

    # Layer 3: Linear -> BN -> ReLU
    h = jnp.dot(h, w3_ref[...], preferred_element_type=jnp.float32)
    h = jnp.maximum(bn(h, 4).astype(act_dt), 0).astype(jnp.bfloat16)

    # Layer 4: Linear (+ bias b4) -> Tanh (final tanh kept in f32)
    h = jnp.dot(h, w4_ref[...], preferred_element_type=jnp.float32)
    h = h + vec_ref[6:7, :o_ref.shape[-1]]
    o_ref[...] = jnp.tanh(h).astype(o_ref.dtype)


# ---------------------------------------------------------------------------
# Wrapper
# ---------------------------------------------------------------------------
@jax.jit
def fc_regression_4layers(x, packed):
    """Forward pass of FCRegression_4layers (training-mode BatchNorm).

    x: (batch, n_input)                    -> (batch, n_out); BN over the whole batch
       (num_minibatch, minibatch, n_input) -> same leading shape; BN per minibatch
       (== applying the PyTorch module independently to each minibatch). The grid
       axis is 'parallel' so v7x shards minibatches across both TensorCores.
    """
    w1, w2, w3, w4, vec = (packed["w1"], packed["w2"], packed["w3"],
                           packed["w4"], packed["vec"])
    kin_p, nh_p = w1.shape
    n_out = w4.shape[1]

    squeeze = x.ndim == 2
    if squeeze:
        x = x[None]
    g, b, n_in = x.shape
    if n_in > kin_p:
        raise ValueError("x feature dim larger than packed w1 rows")
    if n_in < kin_p:   # layer-1 K dim only needs bf16 sublane granularity (16)
        x = jnp.pad(x, ((0, 0), (0, 0), (0, kin_p - n_in)))

    # Explicit VMEM budget: resident bf16 weights + vec + double-buffered x/out
    # chunks + live f32/bf16 activation temporaries. v7x: 64 MiB physical /
    # 32 MiB scoped default; v5e scoped default is only 16 MiB.
    w_bytes = 2 * (w1.size + w2.size + w3.size + w4.size)
    vmem_need = int(2 * b * kin_p * x.dtype.itemsize
                    + 2 * b * n_out * 4
                    + 2 * w_bytes
                    + vec.size * 4
                    + 6 * b * nh_p * 4)
    if vmem_need > _VMEM_CAP_BYTES:
        raise ValueError(
            f"per-step VMEM footprint ~{vmem_need / 2**20:.1f} MiB exceeds "
            f"{_VMEM_CAP_BYTES / 2**20:.0f} MiB; pass x as "
            "(num_minibatch, minibatch, n_input) with a smaller minibatch")
    vmem_limit = min(_VMEM_CAP_BYTES, max(2 * vmem_need, 16 * 2**20))

    flops = 2 * g * b * (kin_p * nh_p + 2 * nh_p * nh_p + nh_p * n_out)
    transcendentals = g * (b * (nh_p + n_out) + 3 * nh_p)
    bytes_accessed = (g * b * kin_p * x.dtype.itemsize + w_bytes
                      + vec.size * 4 + g * b * n_out * 4)

    kernel = functools.partial(_fc4_kernel, bf16_act=_use_bf16_activations())
    const = lambda i: (0, 0)   # weights / vec: DMA'd once, stay VMEM-resident

    out = pl.pallas_call(
        kernel,
        out_shape=jax.ShapeDtypeStruct((g, b, n_out), jnp.float32),
        grid=(g,),
        in_specs=[
            pl.BlockSpec((None, b, kin_p), lambda i: (i, 0, 0)),
            pl.BlockSpec(w1.shape, const),
            pl.BlockSpec(w2.shape, const),
            pl.BlockSpec(w3.shape, const),
            pl.BlockSpec(w4.shape, const),
            pl.BlockSpec(vec.shape, const),
        ],
        out_specs=pl.BlockSpec((None, b, n_out), lambda i: (i, 0, 0)),
        compiler_params=pltpu.CompilerParams(
            dimension_semantics=("parallel",),
            vmem_limit_bytes=vmem_limit),
        cost_estimate=pl.CostEstimate(flops=flops,
                                      transcendentals=transcendentals,
                                      bytes_accessed=bytes_accessed),
    )(x, w1, w2, w3, w4, vec)
    return out[0] if squeeze else out


def prepare_params(params, n_input, n_hidden):
    """One-time packing: bf16 padded weights (stored (in, out)) + one (8, lanes)
    f32 tile holding all per-feature vectors.  b1..b3 intentionally dropped —
    only valid for training-mode (batch-stats) BatchNorm."""
    nh_p = _round_up(n_hidden, LANE)           # lane dims of activations -> 128
    kin_p = _round_up(n_input, SUBLANE_BF16)   # layer-1 K dim: sublane granularity only
    n_out = int(params["w4"].shape[1])
    vw = max(nh_p, _round_up(n_out, LANE))

    def pad_w(w, rows, cols):
        r, c = w.shape
        return jnp.zeros((rows, cols), jnp.bfloat16).at[:r, :c].set(
            w.astype(jnp.bfloat16))

    def pad_vec(v):
        v = jnp.asarray(v, jnp.float32).reshape(-1)
        return jnp.zeros((vw,), jnp.float32).at[:v.shape[0]].set(v)

    vec = jnp.stack([
        pad_vec(params["g1"]), pad_vec(params["be1"]),
        pad_vec(params["g2"]), pad_vec(params["be2"]),
        pad_vec(params["g3"]), pad_vec(params["be3"]),
        pad_vec(params["b4"]),
        jnp.zeros((vw,), jnp.float32),   # pad to 8 rows = whole (8,128) f32 tile(s)
    ])
    return {"w1": pad_w(params["w1"], kin_p, nh_p),
            "w2": pad_w(params["w2"], nh_p, nh_p),
            "w3": pad_w(params["w3"], nh_p, nh_p),
            "w4": pad_w(params["w4"], nh_p, n_out),   # output cols left unpadded
            "vec": vec}


# ---------------------------------------------------------------------------
# Deterministic init matching the PyTorch module (xavier_normal weights,
# default nn.Linear bias init, BN gamma=1 / beta=0), weights stored (in, out).
# ---------------------------------------------------------------------------
def init_params(key, n_input, n_hidden):
    def xavier_normal(k, fan_in, fan_out):
        std = (2.0 / (fan_in + fan_out)) ** 0.5
        return std * jax.random.normal(k, (fan_in, fan_out), dtype=jnp.float32)

    def bias_uniform(k, fan_in, fan_out):
        bound = 1.0 / (fan_in ** 0.5)
        return jax.random.uniform(k, (1, fan_out), dtype=jnp.float32,
                                  minval=-bound, maxval=bound)

    keys = jax.random.split(key, 8)
    dims = [(n_input, n_hidden), (n_hidden, n_hidden),
            (n_hidden, n_hidden), (n_hidden, n_input)]
    params = {}
    for i, (fi, fo) in enumerate(dims, start=1):
        params[f"w{i}"] = xavier_normal(keys[2 * (i - 1)], fi, fo)
        params[f"b{i}"] = bias_uniform(keys[2 * (i - 1) + 1], fi, fo)
    for i, (_, fo) in enumerate(dims[:3], start=1):
        params[f"g{i}"] = jnp.ones((1, fo), dtype=jnp.float32)    # BN gamma
        params[f"be{i}"] = jnp.zeros((1, fo), dtype=jnp.float32)  # BN beta
    return params


# ---------------------------------------------------------------------------
# Pure-f32 JAX reference (true PyTorch math: f32 matmuls, all biases, two-pass
# variance).  The kernel uses bf16 MXU operands, so fidelity is ~1e-2 level.
# ---------------------------------------------------------------------------
def reference_f32(x, params):
    def bn(h, g, b):
        mu = jnp.mean(h, axis=0, keepdims=True)
        var = jnp.mean((h - mu) ** 2, axis=0, keepdims=True)
        return (h - mu) * jax.lax.rsqrt(var + EPS) * g + b

    h = jnp.maximum(bn(x @ params["w1"] + params["b1"],
                       params["g1"], params["be1"]), 0.0)
    h = jnp.tanh(bn(h @ params["w2"] + params["b2"],
                    params["g2"], params["be2"]))
    h = jnp.maximum(bn(h @ params["w3"] + params["b3"],
                       params["g3"], params["be3"]), 0.0)
    return jnp.tanh(h @ params["w4"] + params["b4"])


if __name__ == "__main__":
    n_input, n_hidden = 16, 32
    batch = 256   # fill MXU rows (review: M >= 256 on v6e/v7x, >= 128 on v5e)
    key = jax.random.PRNGKey(0)
    k_x, k_p = jax.random.split(key)
    x = jax.random.normal(k_x, (batch, n_input), dtype=jnp.float32)
    params = init_params(k_p, n_input, n_hidden)
    packed = prepare_params(params, n_input, n_hidden)

    # 1) Single forward over the whole batch (exact module semantics: BN over batch).
    out = jax.block_until_ready(fc_regression_4layers(x, packed))
    assert out.shape == (batch, n_input)
    ref = reference_f32(x, params)
    err = float(jnp.max(jnp.abs(out - ref)))
    assert err < 5e-2, f"fidelity vs f32 reference: max |err| = {err}"

    # 2) Minibatch-grid path: 1-D 'parallel' grid over 4 independent minibatches
    #    of 64 with weights VMEM-resident (constant index_map) — uses both v7x TCs.
    g, mb = 4, 64
    x3 = x.reshape(g, mb, n_input)
    out3 = jax.block_until_ready(fc_regression_4layers(x3, packed))
    assert out3.shape == (g, mb, n_input)
    ref3 = jnp.stack([reference_f32(x3[i], params) for i in range(g)])
    err3 = float(jnp.max(jnp.abs(out3 - ref3)))
    assert err3 < 5e-2, f"minibatch-grid fidelity: max |err| = {err3}"

    print("KERNEL_OK")
</pallas_src>

<mosaic_0001>
module attributes {stable_mosaic.version = 11 : i64} {
  func.func @_fc4_kernel(%arg0: i32, %arg1: memref<1x256x16xf32, #tpu.memory_space<vmem>>, %arg2: memref<16x128xbf16, #tpu.memory_space<vmem>>, %arg3: memref<128x128xbf16, #tpu.memory_space<vmem>>, %arg4: memref<128x128xbf16, #tpu.memory_space<vmem>>, %arg5: memref<128x16xbf16, #tpu.memory_space<vmem>>, %arg6: memref<8x128xf32, #tpu.memory_space<vmem>>, %arg7: memref<1x256x16xf32, #tpu.memory_space<vmem>>) attributes {dimension_semantics = [#tpu.dimension_semantics<parallel>], iteration_bounds = array<i64: 1>, scalar_prefetch = 0 : i64, scratch_operands = 0 : i64, tpu.core_type = #tpu.core_type<tc>, window_params = [{transform_indices = @transform_0, window_bounds = array<i64: 1, 256, 16>}, {pipeline_mode = #tpu.pipeline_mode<synchronous>, transform_indices = @transform_1, window_bounds = array<i64: 16, 128>}, {pipeline_mode = #tpu.pipeline_mode<synchronous>, transform_indices = @transform_2, window_bounds = array<i64: 128, 128>}, {pipeline_mode = #tpu.pipeline_mode<synchronous>, transform_indices = @transform_3, window_bounds = array<i64: 128, 128>}, {pipeline_mode = #tpu.pipeline_mode<synchronous>, transform_indices = @transform_4, window_bounds = array<i64: 128, 16>}, {pipeline_mode = #tpu.pipeline_mode<synchronous>, transform_indices = @transform_5, window_bounds = array<i64: 8, 128>}, {transform_indices = @transform_6, window_bounds = array<i64: 1, 256, 16>}]} {
    %c0 = arith.constant 0 : index
    %c0_0 = arith.constant 0 : index
    %c0_1 = arith.constant 0 : index
    %0 = vector.load %arg1[%c0, %c0_0, %c0_1] : memref<1x256x16xf32, #tpu.memory_space<vmem>>, vector<1x256x16xf32>
    %1 = vector.shape_cast %0 : vector<1x256x16xf32> to vector<256x16xf32>
    %2 = arith.truncf %1 : vector<256x16xf32> to vector<256x16xbf16>
    %c0_2 = arith.constant 0 : index
    %c0_3 = arith.constant 0 : index
    %3 = vector.load %arg2[%c0_2, %c0_3] : memref<16x128xbf16, #tpu.memory_space<vmem>>, vector<16x128xbf16>
    %cst = arith.constant dense<0.000000e+00> : vector<256x128xf32>
    %4 = tpu.matmul %2, %3, %cst {dimension_numbers = #tpu.dot_dimension_numbers<[1], [0], [0], [1], [0, 0, 1, 1], [], []>} : vector<256x16xbf16>, vector<16x128xbf16>, vector<256x128xf32> -> vector<256x128xf32>
    %c0_4 = arith.constant 0 : index
    %c0_5 = arith.constant 0 : index
    %5 = vector.load %arg6[%c0_4, %c0_5] : memref<8x128xf32, #tpu.memory_space<vmem>>, vector<1x128xf32>
    %c1 = arith.constant 1 : index
    %c0_6 = arith.constant 0 : index
    %6 = vector.load %arg6[%c1, %c0_6] : memref<8x128xf32, #tpu.memory_space<vmem>>, vector<1x128xf32>
    %cst_7 = arith.constant dense<0.000000e+00> : vector<128xf32>
    %7 = vector.multi_reduction <add>, %4, %cst_7 [0] : vector<256x128xf32> to vector<128xf32>
    %8 = vector.shape_cast %7 : vector<128xf32> to vector<1x128xf32>
    %cst_8 = arith.constant 3.906250e-03 : f32
    %9 = vector.broadcast %cst_8 : f32 to vector<1x128xf32>
    %10 = arith.mulf %8, %9 : vector<1x128xf32>
    %11 = arith.mulf %4, %4 : vector<256x128xf32>
    %cst_9 = arith.constant dense<0.000000e+00> : vector<128xf32>
    %12 = vector.multi_reduction <add>, %11, %cst_9 [0] : vector<256x128xf32> to vector<128xf32>
    %13 = vector.shape_cast %12 : vector<128xf32> to vector<1x128xf32>
    %cst_10 = arith.constant 3.906250e-03 : f32
    %14 = vector.broadcast %cst_10 : f32 to vector<1x128xf32>
    %15 = arith.mulf %13, %14 : vector<1x128xf32>
    %16 = arith.mulf %10, %10 : vector<1x128xf32>
    %17 = arith.subf %15, %16 : vector<1x128xf32>
    %cst_11 = arith.constant 0.000000e+00 : f32
    %18 = vector.broadcast %cst_11 : f32 to vector<1x128xf32>
    %19 = arith.maximumf %17, %18 : vector<1x128xf32>
    %cst_12 = arith.constant 9.99999974E-6 : f32
    %20 = vector.broadcast %cst_12 : f32 to vector<1x128xf32>
    %21 = arith.addf %19, %20 : vector<1x128xf32>
    %22 = math.rsqrt %21 : vector<1x128xf32>
    %23 = arith.mulf %5, %22 : vector<1x128xf32>
    %24 = arith.mulf %10, %23 : vector<1x128xf32>
    %25 = arith.subf %6, %24 : vector<1x128xf32>
    %26 = vector.broadcast %23 : vector<1x128xf32> to vector<256x128xf32>
    %27 = arith.mulf %4, %26 : vector<256x128xf32>
    %28 = vector.broadcast %25 : vector<1x128xf32> to vector<256x128xf32>
    %29 = arith.addf %27, %28 : vector<256x128xf32>
    %cst_13 = arith.constant 0.000000e+00 : f32
    %30 = vector.broadcast %cst_13 : f32 to vector<256x128xf32>
    %31 = arith.maximumf %29, %30 : vector<256x128xf32>
    %32 = arith.truncf %31 : vector<256x128xf32> to vector<256x128xbf16>
    %c0_14 = arith.constant 0 : index
    %c0_15 = arith.constant 0 : index
    %33 = vector.load %arg3[%c0_14, %c0_15] : memref<128x128xbf16, #tpu.memory_space<vmem>>, vector<128x128xbf16>
    %cst_16 = arith.constant dense<0.000000e+00> : vector<256x128xf32>
    %34 = tpu.matmul %32, %33, %cst_16 {dimension_numbers = #tpu.dot_dimension_numbers<[1], [0], [0], [1], [0, 0, 1, 1], [], []>} : vector<256x128xbf16>, vector<128x128xbf16>, vector<256x128xf32> -> vector<256x128xf32>
    %c2 = arith.constant 2 : index
    %c0_17 = arith.constant 0 : index
    %35 = vector.load %arg6[%c2, %c0_17] : memref<8x128xf32, #tpu.memory_space<vmem>>, vector<1x128xf32>
    %c3 = arith.constant 3 : index
    %c0_18 = arith.constant 0 : index
    %36 = vector.load %arg6[%c3, %c0_18] : memref<8x128xf32, #tpu.memory_space<vmem>>, vector<1x128xf32>
    %cst_19 = arith.constant dense<0.000000e+00> : vector<128xf32>
    %37 = vector.multi_reduction <add>, %34, %cst_19 [0] : vector<256x128xf32> to vector<128xf32>
    %38 = vector.shape_cast %37 : vector<128xf32> to vector<1x128xf32>
    %cst_20 = arith.constant 3.906250e-03 : f32
    %39 = vector.broadcast %cst_20 : f32 to vector<1x128xf32>
    %40 = arith.mulf %38, %39 : vector<1x128xf32>
    %41 = arith.mulf %34, %34 : vector<256x128xf32>
    %cst_21 = arith.constant dense<0.000000e+00> : vector<128xf32>
    %42 = vector.multi_reduction <add>, %41, %cst_21 [0] : vector<256x128xf32> to vector<128xf32>
    %43 = vector.shape_cast %42 : vector<128xf32> to vector<1x128xf32>
    %cst_22 = arith.constant 3.906250e-03 : f32
    %44 = vector.broadcast %cst_22 : f32 to vector<1x128xf32>
    %45 = arith.mulf %43, %44 : vector<1x128xf32>
    %46 = arith.mulf %40, %40 : vector<1x128xf32>
    %47 = arith.subf %45, %46 : vector<1x128xf32>
    %cst_23 = arith.constant 0.000000e+00 : f32
    %48 = vector.broadcast %cst_23 : f32 to vector<1x128xf32>
    %49 = arith.maximumf %47, %48 : vector<1x128xf32>
    %cst_24 = arith.constant 9.99999974E-6 : f32
    %50 = vector.broadcast %cst_24 : f32 to vector<1x128xf32>
    %51 = arith.addf %49, %50 : vector<1x128xf32>
    %52 = math.rsqrt %51 : vector<1x128xf32>
    %53 = arith.mulf %35, %52 : vector<1x128xf32>
    %54 = arith.mulf %40, %53 : vector<1x128xf32>
    %55 = arith.subf %36, %54 : vector<1x128xf32>
    %56 = vector.broadcast %53 : vector<1x128xf32> to vector<256x128xf32>
    %57 = arith.mulf %34, %56 : vector<256x128xf32>
    %58 = vector.broadcast %55 : vector<1x128xf32> to vector<256x128xf32>
    %59 = arith.addf %57, %58 : vector<256x128xf32>
    %60 = math.tanh %59 : vector<256x128xf32>
    %61 = arith.truncf %60 : vector<256x128xf32> to vector<256x128xbf16>
    %c0_25 = arith.constant 0 : index
    %c0_26 = arith.constant 0 : index
    %62 = vector.load %arg4[%c0_25, %c0_26] : memref<128x128xbf16, #tpu.memory_space<vmem>>, vector<128x128xbf16>
    %cst_27 = arith.constant dense<0.000000e+00> : vector<256x128xf32>
    %63 = tpu.matmul %61, %62, %cst_27 {dimension_numbers = #tpu.dot_dimension_numbers<[1], [0], [0], [1], [0, 0, 1, 1], [], []>} : vector<256x128xbf16>, vector<128x128xbf16>, vector<256x128xf32> -> vector<256x128xf32>
    %c4 = arith.constant 4 : index
    %c0_28 = arith.constant 0 : index
    %64 = vector.load %arg6[%c4, %c0_28] : memref<8x128xf32, #tpu.memory_space<vmem>>, vector<1x128xf32>
    %c5 = arith.constant 5 : index
    %c0_29 = arith.constant 0 : index
    %65 = vector.load %arg6[%c5, %c0_29] : memref<8x128xf32, #tpu.memory_space<vmem>>, vector<1x128xf32>
    %cst_30 = arith.constant dense<0.000000e+00> : vector<128xf32>
    %66 = vector.multi_reduction <add>, %63, %cst_30 [0] : vector<256x128xf32> to vector<128xf32>
    %67 = vector.shape_cast %66 : vector<128xf32> to vector<1x128xf32>
    %cst_31 = arith.constant 3.906250e-03 : f32
    %68 = vector.broadcast %cst_31 : f32 to vector<1x128xf32>
    %69 = arith.mulf %67, %68 : vector<1x128xf32>
    %70 = arith.mulf %63, %63 : vector<256x128xf32>
    %cst_32 = arith.constant dense<0.000000e+00> : vector<128xf32>
    %71 = vector.multi_reduction <add>, %70, %cst_32 [0] : vector<256x128xf32> to vector<128xf32>
    %72 = vector.shape_cast %71 : vector<128xf32> to vector<1x128xf32>
    %cst_33 = arith.constant 3.906250e-03 : f32
    %73 = vector.broadcast %cst_33 : f32 to vector<1x128xf32>
    %74 = arith.mulf %72, %73 : vector<1x128xf32>
    %75 = arith.mulf %69, %69 : vector<1x128xf32>
    %76 = arith.subf %74, %75 : vector<1x128xf32>
    %cst_34 = arith.constant 0.000000e+00 : f32
    %77 = vector.broadcast %cst_34 : f32 to vector<1x128xf32>
    %78 = arith.maximumf %76, %77 : vector<1x128xf32>
    %cst_35 = arith.constant 9.99999974E-6 : f32
    %79 = vector.broadcast %cst_35 : f32 to vector<1x128xf32>
    %80 = arith.addf %78, %79 : vector<1x128xf32>
    %81 = math.rsqrt %80 : vector<1x128xf32>
    %82 = arith.mulf %64, %81 : vector<1x128xf32>
    %83 = arith.mulf %69, %82 : vector<1x128xf32>
    %84 = arith.subf %65, %83 : vector<1x128xf32>
    %85 = vector.broadcast %82 : vector<1x128xf32> to vector<256x128xf32>
    %86 = arith.mulf %63, %85 : vector<256x128xf32>
    %87 = vector.broadcast %84 : vector<1x128xf32> to vector<256x128xf32>
    %88 = arith.addf %86, %87 : vector<256x128xf32>
    %cst_36 = arith.constant 0.000000e+00 : f32
    %89 = vector.broadcast %cst_36 : f32 to vector<256x128xf32>
    %90 = arith.maximumf %88, %89 : vector<256x128xf32>
    %91 = arith.truncf %90 : vector<256x128xf32> to vector<256x128xbf16>
    %c0_37 = arith.constant 0 : index
    %c0_38 = arith.constant 0 : index
    %92 = vector.load %arg5[%c0_37, %c0_38] : memref<128x16xbf16, #tpu.memory_space<vmem>>, vector<128x16xbf16>
    %cst_39 = arith.constant dense<0.000000e+00> : vector<256x16xf32>
    %93 = tpu.matmul %91, %92, %cst_39 {dimension_numbers = #tpu.dot_dimension_numbers<[1], [0], [0], [1], [0, 0, 1, 1], [], []>} : vector<256x128xbf16>, vector<128x16xbf16>, vector<256x16xf32> -> vector<256x16xf32>
    %c6 = arith.constant 6 : index
    %c0_40 = arith.constant 0 : index
    %94 = vector.load %arg6[%c6, %c0_40] : memref<8x128xf32, #tpu.memory_space<vmem>>, vector<1x16xf32>
    %95 = vector.broadcast %94 : vector<1x16xf32> to vector<256x16xf32>
    %96 = arith.addf %93, %95 : vector<256x16xf32>
    %97 = math.tanh %96 : vector<256x16xf32>
    %c0_41 = arith.constant 0 : index
    %c0_42 = arith.constant 0 : index
    %c0_43 = arith.constant 0 : index
    %98 = vector.load %arg7[%c0_41, %c0_42, %c0_43] : memref<1x256x16xf32, #tpu.memory_space<vmem>>, vector<1x256x16xf32>
    %99 = vector.shape_cast %98 : vector<1x256x16xf32> to vector<256x16xf32>
    %100 = vector.shape_cast %97 : vector<256x16xf32> to vector<1x256x16xf32>
    tpu.vector_store %arg7[%c0_41, %c0_42, %c0_43], %100 {strides = array<i32>} : memref<1x256x16xf32, #tpu.memory_space<vmem>>, vector<1x256x16xf32>,
    return
  }
  func.func @transform_0(%arg0: i32) -> (i32, i32, i32) {
    %c0_i32 = arith.constant 0 : i32
    %c0_i32_0 = arith.constant 0 : i32
    %c0_i32_1 = arith.constant 0 : i32
    return %arg0, %c0_i32, %c0_i32_0 : i32, i32, i32
  }
  func.func @transform_1(%arg0: i32) -> (i32, i32) {
    %c0_i32 = arith.constant 0 : i32
    %c0_i32_0 = arith.constant 0 : i32
    %c0_i32_1 = arith.constant 0 : i32
    return %c0_i32, %c0_i32_0 : i32, i32
  }
  func.func @transform_2(%arg0: i32) -> (i32, i32) {
    %c0_i32 = arith.constant 0 : i32
    %c0_i32_0 = arith.constant 0 : i32
    %c0_i32_1 = arith.constant 0 : i32
    return %c0_i32, %c0_i32_0 : i32, i32
  }
  func.func @transform_3(%arg0: i32) -> (i32, i32) {
    %c0_i32 = arith.constant 0 : i32
    %c0_i32_0 = arith.constant 0 : i32
    %c0_i32_1 = arith.constant 0 : i32
    return %c0_i32, %c0_i32_0 : i32, i32
  }
  func.func @transform_4(%arg0: i32) -> (i32, i32) {
    %c0_i32 = arith.constant 0 : i32
    %c0_i32_0 = arith.constant 0 : i32
    %c0_i32_1 = arith.constant 0 : i32
    return %c0_i32, %c0_i32_0 : i32, i32
  }
  func.func @transform_5(%arg0: i32) -> (i32, i32) {
    %c0_i32 = arith.constant 0 : i32
    %c0_i32_0 = arith.constant 0 : i32
    %c0_i32_1 = arith.constant 0 : i32
    return %c0_i32, %c0_i32_0 : i32, i32
  }
  func.func @transform_6(%arg0: i32) -> (i32, i32, i32) {
    %c0_i32 = arith.constant 0 : i32
    %c0_i32_0 = arith.constant 0 : i32
    %c0_i32_1 = arith.constant 0 : i32
    return %arg0, %c0_i32, %c0_i32_0 : i32, i32, i32
  }
}

</mosaic_0001>

<bundles_post_ra>
// kernel: fc_regression_4layers.1
= control target key start
LH: loop header
LB: loop body
LE: loop exit
PB: predicated region body
PF: predicated region fallthrough
CT: control target
= control target key end

     0   :  { %vm80_vm0 = vcmask 130048   ;;  %s3432_s1 = inlined_call_operand.vmem [shape: bf16[16,128], index: 1, kind: input, shape index: {}]   ;;  %s3433_s0 = inlined_call_operand.vmem [shape: f32[1,256,16], index: 0, kind: input, shape index: {}]   ;;  %s3434_s2 = inlined_call_operand.vmem [shape: bf16[128,128], index: 2, kind: input, shape index: {}]   ;;  %s3435_s5 = inlined_call_operand.vmem [shape: f32[8,128], index: 5, kind: input, shape index: {}]   ;;  %s3436_s3 = inlined_call_operand.vmem [shape: bf16[128,128], index: 3, kind: input, shape index: {}]   ;;  %s3437_s4 = inlined_call_operand.vmem [shape: bf16[128,16], index: 4, kind: input, shape index: {}]   ;;  %s3438_s6 = inlined_call_operand.vmem [shape: f32[1,256,16], index: 6, kind: output, shape index: {}]  }
   0x1   :  { %v2077_v0 = vld [vmem:[%s3432_s1] sm:$0xff]   ;;  %v25_v2 = vld [vmem:[%s3433_s0 + $0x8] sm:$0xff]  ;;  %v26_v3 = vld [vmem:[%s3433_s0 + $0x10] sm:$0xff] }
   0x2   :  { %v24_v1 = vld [vmem:[%s3433_s0] sm:$0xff]  ;;  %1883 = vmatprep.subr.bf16.mxu0 %v2077_v0  ;;  %v27_v5 = vld [vmem:[%s3433_s0 + $0x18] sm:$0xff]  ;;  %v29_v7 = vld [vmem:[%s3433_s0 + $0x28] sm:$0xff] }
   0x3   :  { %v56_v4 = vpack.c.bf16 %v25_v2, %v24_v1  ;;  %v28_v6 = vld [vmem:[%s3433_s0 + $0x20] sm:$0xff]  ;;  %1884 = vmatpush3.bf16.msra.mxu0 %v2077_v0  ;;  %v57_v8 = vpack.c.bf16 %v27_v5, %v26_v3  ;;  %v30_v10 = vld [vmem:[%s3433_s0 + $0x30] sm:$0xff]  ;;  %v31_v11 = vld [vmem:[%s3433_s0 + $0x38] sm:$0xff] }
   0x4   :  { %v58_v9 = vpack.c.bf16 %v29_v7, %v28_v6  ;;  %v32_v12 = vld [vmem:[%s3433_s0 + $0x40] sm:$0xff]  ;;  %v33_v13 = vld [vmem:[%s3433_s0 + $0x48] sm:$0xff]  ;;  %v59_v14 = vpack.c.bf16 %v31_v11, %v30_v10  ;;  %v34_v16 = vld [vmem:[%s3433_s0 + $0x50] sm:$0xff] }
   0x5   :  { %1885 = vmatprep.mubr.msk.bf16.mxu0 %vm80_vm0, %v56_v4  ;;  %v60_v15 = vpack.c.bf16 %v33_v13, %v32_v12  ;;  %v35_v17 = vld [vmem:[%s3433_s0 + $0x58] sm:$0xff]  ;;  %v36_v18 = vld [vmem:[%s3433_s0 + $0x60] sm:$0xff]  ;;  %v37_v19 = vld [vmem:[%s3433_s0 + $0x68] sm:$0xff] }
   0x6   :  { %1886 = vmatmul.mubr.msk.bf16.vlgmr.msra.gmra.mxu0 %vm80_vm0, %v57_v8  ;;  %v61_v20 = vpack.c.bf16 %v35_v17, %v34_v16  ;;  %v62_v21 = vpack.c.bf16 %v37_v19, %v36_v18  ;;  %v38_v22 = vld [vmem:[%s3433_s0 + $0x70] sm:$0xff]  ;;  %v39_v23 = vld [vmem:[%s3433_s0 + $0x78] sm:$0xff]  ;;  %v40_v24 = vld [vmem:[%s3433_s0 + $0x80] sm:$0xff] }
   0x7   :  { %1889 = vmatprep.mubr.msk.bf16.mxu0 %vm80_vm0, %v58_v9  ;;  %v41_v25 = vld [vmem:[%s3433_s0 + $0x88] sm:$0xff]  ;;  %v63_v26 = vpack.c.bf16 %v39_v23, %v38_v22  ;;  %v42_v28 = vld [vmem:[%s3433_s0 + $0x90] sm:$0xff]  ;;  %v43_v29 = vld [vmem:[%s3433_s0 + $0x98] sm:$0xff] }
   0x8   :  { %v64_v27 = vpack.c.bf16 %v41_v25, %v40_v24  ;;  %v44_v30 = vld [vmem:[%s3433_s0 + $0xa0] sm:$0xff]  ;;  %v45_v31 = vld [vmem:[%s3433_s0 + $0xa8] sm:$0xff]  ;;  %v65_v32 = vpack.c.bf16 %v43_v29, %v42_v28  ;;  %v46_v34 = vld [vmem:[%s3433_s0 + $0xb0] sm:$0xff] }
   0x9   :  { %v66_v33 = vpack.c.bf16 %v45_v31, %v44_v30  ;;  %v47_v35 = vld [vmem:[%s3433_s0 + $0xb8] sm:$0xff]  ;;  %v48_v36 = vld [vmem:[%s3433_s0 + $0xc0] sm:$0xff]  ;;  %v49_v37 = vld [vmem:[%s3433_s0 + $0xc8] sm:$0xff] }
   0xa   :  { %v67_v38 = vpack.c.bf16 %v47_v35, %v46_v34  ;;  %v68_v39 = vpack.c.bf16 %v49_v37, %v48_v36  ;;  %v50_v40 = vld [vmem:[%s3433_s0 + $0xd0] sm:$0xff]  ;;  %v51_v41 = vld [vmem:[%s3433_s0 + $0xd8] sm:$0xff]  ;;  %v52_v42 = vld [vmem:[%s3433_s0 + $0xe0] sm:$0xff] }
   0xb   :  { %v53_v43 = vld [vmem:[%s3433_s0 + $0xe8] sm:$0xff]  ;;  %v69_v44 = vpack.c.bf16 %v51_v41, %v50_v40  ;;  %v54_v46 = vld [vmem:[%s3433_s0 + $0xf0] sm:$0xff]  ;;  %v55_v47 = vld [vmem:[%s3433_s0 + $0xf8] sm:$0xff] }
   0xc   :  { %v70_v45 = vpack.c.bf16 %v53_v43, %v52_v42  ;;  %v71_v48 = vpack.c.bf16 %v55_v47, %v54_v46  ;;  %v2078_v49 = vld [vmem:[%s3434_s2 + $0x38] sm:$0xff]   ;;  %v2079_v50 = vld [vmem:[%s3434_s2 + $0x30] sm:$0xff]   ;;  %v2080_v51 = vld [vmem:[%s3434_s2 + $0x28] sm:$0xff]  }
   0xd   :  { %1917 = vmatprep.subr.bf16.mxu1 %v2078_v49  ;;  %v2081_v52 = vld [vmem:[%s3434_s2 + $0x20] sm:$0xff]   ;;  %v2082_v53 = vld [vmem:[%s3434_s2 + $0x18] sm:$0xff]   ;;  %v2083_v54 = vld [vmem:[%s3434_s2 + $0x10] sm:$0xff]  }
   0xe   :  { %1890 = vmatmul.mubr.msk.bf16.gmra.mxu0 %vm80_vm0, %v59_v14  ;;  %1918 = vmatpush3.bf16.msra.mxu1 %v2078_v49  ;;  %v2084_v55 = vld [vmem:[%s3434_s2 + $0x8] sm:$0xff]   ;;  %v2085_v56 = vld [vmem:[%s3434_s2] sm:$0xff]  }
   0xf   :  { %1893 = vmatprep.mubr.msk.bf16.mxu0 %vm80_vm0, %v60_v15  ;;  %1919 = vmatprep.subr.bf16.mxu1 %v2079_v50 }
  0x12   :  { %1920 = vmatpush3.bf16.msra.mxu1 %v2079_v50 }
  0x13   :  { %1921 = vmatprep.subr.bf16.mxu1 %v2080_v51 }
  0x16   :  { %1894 = vmatmul.mubr.msk.bf16.gmra.mxu0 %vm80_vm0, %v61_v20  ;;  %1922 = vmatpush3.bf16.msra.mxu1 %v2080_v51 }
  0x17   :  { %1897 = vmatprep.mubr.msk.bf16.mxu0 %vm80_vm0, %v62_v21  ;;  %1923 = vmatprep.subr.bf16.mxu1 %v2081_v52 }
  0x1a   :  { %1924 = vmatpush3.bf16.msra.mxu1 %v2081_v52 }
  0x1b   :  { %1925 = vmatprep.subr.bf16.mxu1 %v2082_v53 }
  0x1e   :  { %1898 = vmatmul.mubr.msk.bf16.gmra.mxu0 %vm80_vm0, %v63_v26  ;;  %1926 = vmatpush3.bf16.msra.mxu1 %v2082_v53 }
  0x1f   :  { %1901 = vmatprep.mubr.msk.bf16.mxu0 %vm80_vm0, %v64_v27  ;;  %1927 = vmatprep.subr.bf16.mxu1 %v2083_v54 }
  0x22   :  { %1928 = vmatpush3.bf16.msra.mxu1 %v2083_v54 }
  0x23   :  { %1929 = vmatprep.subr.bf16.mxu1 %v2084_v55 }
  0x26   :  { %1902 = vmatmul.mubr.msk.bf16.gmra.mxu0 %vm80_vm0, %v65_v32  ;;  %1930 = vmatpush3.bf16.msra.mxu1 %v2084_v55 }
  0x27   :  { %1905 = vmatprep.mubr.msk.bf16.mxu0 %vm80_vm0, %v66_v33  ;;  %1931 = vmatprep.subr.bf16.mxu1 %v2085_v56 }
  0x2a   :  { %1932 = vmatpush3.bf16.msra.mxu1 %v2085_v56 }
  0x2e   :  { %1906 = vmatmul.mubr.msk.bf16.gmra.mxu0 %vm80_vm0, %v67_v38 }
  0x2f   :  { %1909 = vmatprep.mubr.msk.bf16.mxu0 %vm80_vm0, %v68_v39 }
  0x36   :  { %1910 = vmatmul.mubr.msk.bf16.gmra.mxu0 %vm80_vm0, %v69_v44 }
  0x37   :  { %1913 = vmatprep.mubr.msk.bf16.mxu0 %vm80_vm0, %v70_v45 }
  0x3e   :  { %1914 = vmatmul.mubr.msk.bf16.gmra.mxu0 %vm80_vm0, %v71_v48 }
  0xc6   :  { %v2410_v57 = vpop.f32.mrf.mxu0 }
  0xc7   :  { %v332_v1 = vmul.f32 %v2410_v57, %v2410_v57 }
  0xc8   :  { %v2412_v58 = vpop.f32.mrf.mxu0 }
  0xc9   :  { %v330_v61 = vmul.f32 %v2412_v58, %v2412_v58 }
  0xca   :  { %v2414_v59 = vpop.f32.mrf.mxu0 }
  0xcb   :  { %v333_v5 = vmul.f32 %v2414_v59, %v2414_v59 }
  0xcc   :  { %v2416_v60 = vpop.f32.mrf.mxu0 }
  0xcd   :  { %v292_v62 = vadd.f32 %v2416_v60, %v2412_v58  ;;  %v331_v63 = vmul.f32 %v2416_v60, %v2416_v60 }
  0xce   :  { %v2424_v0 = vpop.f32.mrf.mxu0 }
  0xcf   :  { %v293_v2 = vadd.f32 %v2410_v57, %v292_v62  ;;  %v362_v3 = vadd.f32 %v331_v63, %v330_v61  ;;  %v336_v17 = vmul.f32 %v2424_v0, %v2424_v0 }
  0xd0   :  { %v2429_v4 = vpop.f32.mrf.mxu0 }
  0xd1   :  { %v363_v6 = vadd.f32 %v362_v3, %v332_v1  ;;  %v294_v7 = vadd.f32 %v2414_v59, %v293_v2  ;;  %v334_v10 = vmul.f32 %v2429_v4, %v2429_v4 }
  0xd2   :  { %v2434_v8 = vpop.f32.mrf.mxu0 }
  0xd3   :  { %v295_v9 = vadd.f32 %v294_v7, %v2429_v4  ;;  %v364_v11 = vadd.f32 %v363_v6, %v333_v5  ;;  %v337_v21 = vmul.f32 %v2434_v8, %v2434_v8 }
  0xd4   :  { %v2439_v12 = vpop.f32.mrf.mxu0 }
  0xd5   :  { %v365_v13 = vadd.f32 %v364_v11, %v334_v10  ;;  %v296_v14 = vadd.f32 %v295_v9, %v2439_v12  ;;  %v335_v15 = vmul.f32 %v2439_v12, %v2439_v12 }
  0xd6   :  { %v2444_v16 = vpop.f32.mrf.mxu0 }
  0xd7   :  { %v297_v18 = vadd.f32 %v2424_v0, %v296_v14  ;;  %v366_v19 = vadd.f32 %v365_v13, %v335_v15  ;;  %v340_v33 = vmul.f32 %v2444_v16, %v2444_v16 }
  0xd8   :  { %v2449_v20 = vpop.f32.mrf.mxu0 }
  0xd9   :  { %v367_v22 = vadd.f32 %v366_v19, %v336_v17  ;;  %v298_v23 = vadd.f32 %v2434_v8, %v297_v18  ;;  %v338_v26 = vmul.f32 %v2449_v20, %v2449_v20 }
  0xda   :  { %v2454_v24 = vpop.f32.mrf.mxu0 }
  0xdb   :  { %v299_v25 = vadd.f32 %v298_v23, %v2449_v20  ;;  %v368_v27 = vadd.f32 %v367_v22, %v337_v21  ;;  %v341_v37 = vmul.f32 %v2454_v24, %v2454_v24 }
  0xdc   :  { %v2459_v28 = vpop.f32.mrf.mxu0 }
  0xdd   :  { %v369_v29 = vadd.f32 %v368_v27, %v338_v26  ;;  %v300_v30 = vadd.f32 %v299_v25, %v2459_v28  ;;  %v339_v31 = vmul.f32 %v2459_v28, %v2459_v28 }
  0xde   :  { %v2464_v32 = vpop.f32.mrf.mxu0 }
  0xdf   :  { %v301_v34 = vadd.f32 %v2444_v16, %v300_v30  ;;  %v370_v35 = vadd.f32 %v369_v29, %v339_v31  ;;  %v344_v49 = vmul.f32 %v2464_v32, %v2464_v32 }
  0xe0   :  { %v2469_v36 = vpop.f32.mrf.mxu0 }
  0xe1   :  { %v371_v38 = vadd.f32 %v370_v35, %v340_v33  ;;  %v302_v39 = vadd.f32 %v2454_v24, %v301_v34  ;;  %v342_v42 = vmul.f32 %v2469_v36, %v2469_v36 }
  0xe2   :  { %v2474_v40 = vpop.f32.mrf.mxu0 }
  0xe3   :  { %v303_v41 = vadd.f32 %v302_v39, %v2469_v36  ;;  %v372_v43 = vadd.f32 %v371_v38, %v341_v37  ;;  %v345_v53 = vmul.f32 %v2474_v40, %v2474_v40 }
  0xe4   :  { %v2479_v44 = vpop.f32.mrf.mxu0 }
  0xe5   :  { %v373_v45 = vadd.f32 %v372_v43, %v342_v42  ;;  %v304_v46 = vadd.f32 %v303_v41, %v2479_v44  ;;  %v343_v47 = vmul.f32 %v2479_v44, %v2479_v44 }
  0xe6   :  { %v2484_v48 = vpop.f32.mrf.mxu0 }
  0xe7   :  { %v305_v50 = vadd.f32 %v2464_v32, %v304_v46  ;;  %v374_v51 = vadd.f32 %v373_v45, %v343_v47  ;;  %v348_v7 = vmul.f32 %v2484_v48, %v2484_v48 }
  0xe8   :  { %v2489_v52 = vpop.f32.mrf.mxu0 }
  0xe9   :  { %v375_v54 = vadd.f32 %v374_v51, %v344_v49  ;;  %v306_v55 = vadd.f32 %v2474_v40, %v305_v50  ;;  %v346_v62 = vmul.f32 %v2489_v52, %v2489_v52 }
  0xea   :  { %v2494_v56 = vpop.f32.mrf.mxu0 }
  0xeb   :  { %v307_v61 = vadd.f32 %v306_v55, %v2489_v52  ;;  %v376_v63 = vadd.f32 %v375_v54, %v345_v53  ;;  %v349_v13 = vmul.f32 %v2494_v56, %v2494_v56 }
  0xec   :  { %v2499_v1 = vpop.f32.mrf.mxu0 }
  0xed   :  { %v377_v2 = vadd.f32 %v376_v63, %v346_v62  ;;  %v308_v3 = vadd.f32 %v307_v61, %v2499_v1  ;;  %v347_v5 = vmul.f32 %v2499_v1, %v2499_v1 }
  0xee   :  { %v2504_v6 = vpop.f32.mrf.mxu0 }
  0xef   :  { %v309_v9 = vadd.f32 %v2484_v48, %v308_v3  ;;  %v378_v10 = vadd.f32 %v377_v2, %v347_v5  ;;  %v352_v29 = vmul.f32 %v2504_v6, %v2504_v6 }
  0xf0   :  { %v2509_v11 = vpop.f32.mrf.mxu0 }
  0xf1   :  { %v379_v14 = vadd.f32 %v378_v10, %v348_v7  ;;  %v310_v15 = vadd.f32 %v2494_v56, %v309_v9  ;;  %v350_v19 = vmul.f32 %v2509_v11, %v2509_v11 }
  0xf2   :  { %v2514_v17 = vpop.f32.mrf.mxu0 }
  0xf3   :  { %v311_v18 = vadd.f32 %v310_v15, %v2509_v11  ;;  %v380_v21 = vadd.f32 %v379_v14, %v349_v13  ;;  %v353_v34 = vmul.f32 %v2514_v17, %v2514_v17 }
  0xf4   :  { %v2519_v22 = vpop.f32.mrf.mxu0 }
  0xf5   :  { %v381_v23 = vadd.f32 %v380_v21, %v350_v19  ;;  %v312_v25 = vadd.f32 %v311_v18, %v2519_v22  ;;  %v351_v26 = vmul.f32 %v2519_v22, %v2519_v22 }
  0xf6   :  { %v2524_v27 = vpop.f32.mrf.mxu0 }
  0xf7   :  { %v313_v30 = vadd.f32 %v2504_v6, %v312_v25  ;;  %v382_v31 = vadd.f32 %v381_v23, %v351_v26  ;;  %v356_v50 = vmul.f32 %v2524_v27, %v2524_v27 }
  0xf8   :  { %v2529_v33 = vpop.f32.mrf.mxu0 }
  0xf9   :  { %v383_v35 = vadd.f32 %v382_v31, %v352_v29  ;;  %v314_v37 = vadd.f32 %v2514_v17, %v313_v30  ;;  %v354_v41 = vmul.f32 %v2529_v33, %v2529_v33 }
  0xfa   :  { %v2534_v38 = vpop.f32.mrf.mxu0 }
  0xfb   :  { %v315_v39 = vadd.f32 %v314_v37, %v2529_v33  ;;  %v384_v42 = vadd.f32 %v383_v35, %v353_v34  ;;  %v357_v55 = vmul.f32 %v2534_v38, %v2534_v38 }
  0xfc   :  { %v2539_v43 = vpop.f32.mrf.mxu0 }
  0xfd   :  { %v385_v45 = vadd.f32 %v384_v42, %v354_v41  ;;  %v316_v46 = vadd.f32 %v315_v39, %v2539_v43  ;;  %v355_v47 = vmul.f32 %v2539_v43, %v2539_v43 }
  0xfe   :  { %v2544_v49 = vpop.f32.mrf.mxu0 }
  0xff   :  { %v317_v51 = vadd.f32 %v2524_v27, %v316_v46  ;;  %v386_v53 = vadd.f32 %v385_v45, %v355_v47  ;;  %v360_v14 = vmul.f32 %v2544_v49, %v2544_v49 }
 0x100   :  { %v2549_v54 = vpop.f32.mrf.mxu0 }
 0x101   :  { %v387_v61 = vadd.f32 %v386_v53, %v356_v50  ;;  %v318_v62 = vadd.f32 %v2534_v38, %v317_v51  ;;  %v358_v3 = vmul.f32 %v2549_v54, %v2549_v54 }
 0x102   :  { %v2554_v63 = vpop.f32.mrf.mxu0 }
 0x103   :  { %v319_v2 = vadd.f32 %v318_v62, %v2549_v54  ;;  %v388_v5 = vadd.f32 %v387_v61, %v357_v55  ;;  %v361_v19 = vmul.f32 %v2554_v63, %v2554_v63  ;;  %v290_v62 = vld [vmem:[%s3435_s5] sm:$0x1] }
 0x104   :  { %v2559_v7 = vpop.f32.mrf.mxu0 }
 0x105   :  { %v389_v9 = vadd.f32 %v388_v5, %v358_v3  ;;  %v320_v10 = vadd.f32 %v319_v2, %v2559_v7  ;;  %v359_v13 = vmul.f32 %v2559_v7, %v2559_v7  ;;  %v408_v2 = vlaneseq }
 0x107   :  { %v321_v15 = vadd.f32 %v2544_v49, %v320_v10  ;;  %v390_v18 = vadd.f32 %v389_v9, %v359_v13  ;;  %v409_v9 = vshrl.u32 %v408_v2, 7  ;;  %v291_v13 = vld [vmem:[%s3435_s5 + $0x1] sm:$0x1] }
 0x109   :  { %v322_v21 = vadd.f32 %v2554_v63, %v321_v15  ;;  %v391_v23 = vadd.f32 %v390_v18, %v360_v14  ;;  %v2576_v14 = vsub.s32 0, %v409_v9 }
 0x10b   :  { %v323_v25 = vrot.slane %v322_v21, 4  ;;  %v392_v26 = vadd.f32 %v391_v23, %v361_v19 }
 0x10d   :  { %v324_v29 = vadd.f32 %v323_v25, %v322_v21  ;;  %v393_v30 = vrot.slane %v392_v26, 4 }
 0x10f   :  { %v325_v31 = vrot.slane %v324_v29, 2  ;;  %v394_v34 = vadd.f32 %v393_v30, %v392_v26 }
 0x111   :  { %v326_v35 = vadd.f32 %v325_v31, %v324_v29  ;;  %v395_v37 = vrot.slane %v394_v34, 2 }
 0x113   :  { %v327_v39 = vrot.slane %v326_v35, 1  ;;  %v396_v41 = vadd.f32 %v395_v37, %v394_v34 }
 0x115   :  { %v328_v42 = vadd.f32 %v327_v39, %v326_v35  ;;  %v397_v45 = vrot.slane %v396_v41, 1 }
 0x117   :  { %v329_v46 = vmul.f32 0.00390625, %v328_v42  ;;  %v398_v47 = vadd.f32 %v397_v45, %v396_v41 }
 0x119   :  { %v399_v50 = vmul.f32 0.00390625, %v398_v47  ;;  %v400_v51 = vmul.f32 %v329_v46, %v329_v46 }
 0x11b   :  { %v401_v53 = vsub.f32 %v399_v50, %v400_v51 }
 0x11d   :  { %v402_v55 = vmax.f32 %v401_v53, 0.0 }
 0x11f   :  { %v403_v61 = vadd.f32 1e-05, %v402_v55 }
 0x121   :  { %2102 = vrsqrt.f32 %v403_v61 }
 0x12e   :  { %v2103_v3 = vpop.eup %2102 }
 0x12f   :  { %v405_v5 = vmul.f32 %v2103_v3, %v290_v62 }
 0x131   :  { %v406_v10 = vmul.f32 %v405_v5, %v329_v46  ;;  %v2579_v18 = vrot.slane %v405_v5, %v2576_v14 }
 0x133   :  { %v407_v15 = vsub.f32 %v291_v13, %v406_v10  ;;  %v414_v21 = vmul.f32 %v2410_v57, %v2579_v18  ;;  %v415_v23 = vmul.f32 %v2414_v59, %v2579_v18  ;;  %v416_v25 = vmul.f32 %v2579_v18, %v2429_v4 }
 0x134   :  { %v417_v26 = vmul.f32 %v2579_v18, %v2439_v12  ;;  %v412_v31 = vmul.f32 %v2579_v18, %v2412_v58  ;;  %v413_v34 = vmul.f32 %v2579_v18, %v2416_v60  ;;  %v418_v58 = vmul.f32 %v2424_v0, %v2579_v18 }
 0x135   :  { %v2582_v19 = vrot.slane %v407_v15, %v2576_v14  ;;  %v419_v60 = vmul.f32 %v2434_v8, %v2579_v18  ;;  %v420_v47 = vmul.f32 %v2579_v18, %v2449_v20  ;;  %v421_v50 = vmul.f32 %v2579_v18, %v2459_v28 }
 0x136   :  { %v442_v53 = vmul.f32 %v2544_v49, %v2579_v18  ;;  %v443_v55 = vmul.f32 %v2554_v63, %v2579_v18  ;;  %v422_v9 = vmul.f32 %v2444_v16, %v2579_v18  ;;  %v423_v10 = vmul.f32 %v2454_v24, %v2579_v18 }
 0x137   :  { %v450_v29 = vadd.f32 %v2582_v19, %v414_v21  ;;  %v451_v30 = vadd.f32 %v2582_v19, %v415_v23  ;;  %v452_v57 = vadd.f32 %v2582_v19, %v416_v25  ;;  %v453_v59 = vadd.f32 %v2582_v19, %v417_v26 }
 0x138   :  { %v448_v35 = vadd.f32 %v2582_v19, %v412_v31  ;;  %v449_v4 = vadd.f32 %v2582_v19, %v413_v34  ;;  %v454_v61 = vadd.f32 %v2582_v19, %v418_v58  ;;  %v455_v0 = vadd.f32 %v2582_v19, %v419_v60 }
 0x139   :  { %v482_v37 = vmax.f32 %v450_v29, 0.0  ;;  %v483_v12 = vmax.f32 %v451_v30, 0.0  ;;  %v484_v42 = vmax.f32 %v452_v57, 0.0  ;;  %v485_v45 = vmax.f32 %v453_v59, 0.0 }
 0x13a   :  { %v480_v39 = vmax.f32 %v448_v35, 0.0  ;;  %v481_v41 = vmax.f32 %v449_v4, 0.0  ;;  %v456_v8 = vadd.f32 %v2582_v19, %v420_v47  ;;  %v457_v62 = vadd.f32 %v2582_v19, %v421_v50 }
 0x13b   :  { %v513_v46 = vpack.c.bf16 %v483_v12, %v482_v37  ;;  %v514_v20 = vpack.c.bf16 %v485_v45, %v484_v42  ;;  %v478_v2 = vadd.f32 %v2582_v19, %v442_v53  ;;  %v479_v28 = vadd.f32 %v2582_v19, %v443_v55 }
 0x13c   :  { %v512_v51 = vpack.c.bf16 %v481_v41, %v480_v39  ;;  %v486_v49 = vmax.f32 %v454_v61, 0.0  ;;  %v487_v3 = vmax.f32 %v455_v0, 0.0  ;;  %v488_v5 = vmax.f32 %v456_v8, 0.0 }
 0x13d   :  { %v489_v63 = vmax.f32 %v457_v62, 0.0  ;;  %v510_v13 = vmax.f32 %v478_v2, 0.0  ;;  %v511_v15 = vmax.f32 %v479_v28, 0.0  ;;  %v424_v21 = vmul.f32 %v2579_v18, %v2469_v36 }
 0x13e   :  { %1933 = vmatprep.mubr.bf16.mxu1 %v512_v51  ;;  %v425_v23 = vmul.f32 %v2579_v18, %v2479_v44  ;;  %v458_v25 = vadd.f32 %v2582_v19, %v422_v9  ;;  %v459_v26 = vadd.f32 %v2582_v19, %v423_v10  ;;  %v515_v29 = vpack.c.bf16 %v487_v3, %v486_v49 }
 0x13f   :  { %1934 = vmatmul.mubr.bf16.vlgmr.msra.gmra.mxu1 %v513_v46  ;;  %v2630_v30 = vpack.c.bf16 %v511_v15, %v510_v13  ;;  %v460_v16 = vadd.f32 %v2582_v19, %v424_v21  ;;  %v516_v24 = vpack.c.bf16 %v489_v63, %v488_v5  ;;  %v426_v44 = vmul.f32 %v2464_v32, %v2579_v18 }
 0x140   :  { %1937 = vmatprep.mubr.bf16.mxu1 %v514_v20  ;;  %v461_v31 = vadd.f32 %v2582_v19, %v425_v23  ;;  %v490_v34 = vmax.f32 %v458_v25, 0.0  ;;  %v491_v57 = vmax.f32 %v459_v26, 0.0  ;;  %v427_v35 = vmul.f32 %v2474_v40, %v2579_v18 }
 0x141   :  { %v492_v36 = vmax.f32 %v460_v16, 0.0  ;;  %v428_v4 = vmul.f32 %v2579_v18, %v2489_v52  ;;  %v429_v37 = vmul.f32 %v2579_v18, %v2499_v1  ;;  %v462_v12 = vadd.f32 %v2582_v19, %v426_v44 }
 0x142   :  { %v493_v59 = vmax.f32 %v461_v31, 0.0  ;;  %v463_v39 = vadd.f32 %v2582_v19, %v427_v35  ;;  %v517_v41 = vpack.c.bf16 %v491_v57, %v490_v34  ;;  %v430_v52 = vmul.f32 %v2484_v48, %v2579_v18 }
 0x143   :  { %v464_v42 = vadd.f32 %v2582_v19, %v428_v4  ;;  %v465_v45 = vadd.f32 %v2582_v19, %v429_v37  ;;  %v494_v32 = vmax.f32 %v462_v12, 0.0  ;;  %v431_v1 = vmul.f32 %v2494_v56, %v2579_v18 }
 0x144   :  { %v518_v58 = vpack.c.bf16 %v493_v59, %v492_v36  ;;  %v495_v40 = vmax.f32 %v463_v39, 0.0  ;;  %v432_v47 = vmul.f32 %v2579_v18, %v2509_v11  ;;  %v433_v50 = vmul.f32 %v2579_v18, %v2519_v22 }
 0x145   :  { %v496_v60 = vmax.f32 %v464_v42, 0.0  ;;  %v497_v46 = vmax.f32 %v465_v45, 0.0  ;;  %v466_v51 = vadd.f32 %v2582_v19, %v430_v52  ;;  %v467_v53 = vadd.f32 %v2582_v19, %v431_v1  ;;  %v2086_v42 = vld [vmem:[%s3436_s3 + $0x38] sm:$0xff]  }
 0x146   :  { %v519_v55 = vpack.c.bf16 %v495_v40, %v494_v32  ;;  %v468_v61 = vadd.f32 %v2582_v19, %v432_v47  ;;  %v469_v0 = vadd.f32 %v2582_v19, %v433_v50  ;;  %v434_v11 = vmul.f32 %v2504_v6, %v2579_v18  ;;  %1965 = vmatprep.subr.bf16.mxu0 %v2086_v42  ;;  %v2087_v47 = vld [vmem:[%s3436_s3 + $0x30] sm:$0xff]  }
 0x147   :  { %1938 = vmatmul.mubr.bf16.gmra.mxu1 %v515_v29  ;;  %v520_v8 = vpack.c.bf16 %v497_v46, %v496_v60  ;;  %v498_v48 = vmax.f32 %v466_v51, 0.0  ;;  %v499_v56 = vmax.f32 %v467_v53, 0.0  ;;  %v435_v22 = vmul.f32 %v2514_v17, %v2579_v18  ;;  %1966 = vmatpush3.bf16.msra.mxu0 %v2086_v42 }
 0x148   :  { %1941 = vmatprep.mubr.bf16.mxu1 %v516_v24  ;;  %v500_v62 = vmax.f32 %v468_v61, 0.0  ;;  %v501_v20 = vmax.f32 %v469_v0, 0.0  ;;  %v436_v2 = vmul.f32 %v2579_v18, %v2529_v33  ;;  %v437_v28 = vmul.f32 %v2579_v18, %v2539_v43  ;;  %1967 = vmatprep.subr.bf16.mxu0 %v2087_v47 }
 0x149   :  { %v470_v49 = vadd.f32 %v2582_v19, %v434_v11  ;;  %v471_v3 = vadd.f32 %v2582_v19, %v435_v22  ;;  %v521_v5 = vpack.c.bf16 %v499_v56, %v498_v48  ;;  %v438_v33 = vmul.f32 %v2524_v27, %v2579_v18  ;;  %v2088_v56 = vld [vmem:[%s3436_s3 + $0x28] sm:$0xff]  }
 0x14a   :  { %v472_v63 = vadd.f32 %v2582_v19, %v436_v2  ;;  %v473_v9 = vadd.f32 %v2582_v19, %v437_v28  ;;  %v522_v10 = vpack.c.bf16 %v501_v20, %v500_v62  ;;  %v439_v43 = vmul.f32 %v2534_v38, %v2579_v18 }
 0x14b   :  { %v502_v6 = vmax.f32 %v470_v49, 0.0  ;;  %v503_v17 = vmax.f32 %v471_v3, 0.0  ;;  %v441_v21 = vmul.f32 %v2579_v18, %v2559_v7  ;;  %v440_v23 = vmul.f32 %v2579_v18, %v2549_v54  ;;  %1968 = vmatpush3.bf16.msra.mxu0 %v2087_v47 }
 0x14c   :  { %v504_v13 = vmax.f32 %v472_v63, 0.0  ;;  %v505_v15 = vmax.f32 %v473_v9, 0.0  ;;  %v474_v25 = vadd.f32 %v2582_v19, %v438_v33  ;;  %v475_v26 = vadd.f32 %v2582_v19, %v439_v43  ;;  %1969 = vmatprep.subr.bf16.mxu0 %v2088_v56  ;;  %v2090_v43 = vld [vmem:[%s3436_s3 + $0x18] sm:$0xff]  }
 0x14d   :  { %v523_v29 = vpack.c.bf16 %v503_v17, %v502_v6  ;;  %v477_v16 = vadd.f32 %v2582_v19, %v441_v21  ;;  %v476_v31 = vadd.f32 %v2582_v19, %v440_v23 }
 0x14e   :  { %v524_v24 = vpack.c.bf16 %v505_v15, %v504_v13  ;;  %v506_v27 = vmax.f32 %v474_v25, 0.0  ;;  %v507_v38 = vmax.f32 %v475_v26, 0.0  ;;  %v2091_v26 = vld [vmem:[%s3436_s3 + $0x10] sm:$0xff]  }
 0x14f   :  { %1942 = vmatmul.mubr.bf16.gmra.mxu1 %v517_v41  ;;  %v508_v34 = vmax.f32 %v476_v31, 0.0  ;;  %v509_v57 = vmax.f32 %v477_v16, 0.0  ;;  %1970 = vmatpush3.bf16.msra.mxu0 %v2088_v56 }
 0x150   :  { %1945 = vmatprep.mubr.bf16.mxu1 %v518_v58  ;;  %v525_v7 = vpack.c.bf16 %v507_v38, %v506_v27  ;;  %v2092_v38 = vld [vmem:[%s3436_s3 + $0x8] sm:$0xff]  }
 0x151   :  { %v526_v36 = vpack.c.bf16 %v509_v57, %v508_v34 }
 0x157   :  { %1946 = vmatmul.mubr.bf16.gmra.mxu1 %v519_v55 }
 0x158   :  { %1949 = vmatprep.mubr.bf16.mxu1 %v520_v8 }
 0x15f   :  { %1950 = vmatmul.mubr.bf16.gmra.mxu1 %v521_v5  ;;  %v2089_v5 = vld [vmem:[%s3436_s3 + $0x20] sm:$0xff]  }
 0x160   :  { %1953 = vmatprep.mubr.bf16.mxu1 %v522_v10  ;;  %1971 = vmatprep.subr.bf16.mxu0 %v2089_v5 }
 0x161   :  { %1972 = vmatpush3.bf16.msra.mxu0 %v2089_v5 }
 0x162   :  { %1973 = vmatprep.subr.bf16.mxu0 %v2090_v43 }
 0x165   :  { %1974 = vmatpush3.bf16.msra.mxu0 %v2090_v43 }
 0x166   :  { %1975 = vmatprep.subr.bf16.mxu0 %v2091_v26 }
 0x167   :  { %1954 = vmatmul.mubr.bf16.gmra.mxu1 %v523_v29 }
 0x168   :  { %1957 = vmatprep.mubr.bf16.mxu1 %v524_v24 }
 0x169   :  { %1976 = vmatpush3.bf16.msra.mxu0 %v2091_v26 }
 0x16a   :  { %1977 = vmatprep.subr.bf16.mxu0 %v2092_v38 }
 0x16d   :  { %1978 = vmatpush3.bf16.msra.mxu0 %v2092_v38 }
 0x16f   :  { %1958 = vmatmul.mubr.bf16.gmra.mxu1 %v525_v7 }
 0x170   :  { %1961 = vmatprep.mubr.bf16.mxu1 %v526_v36 }
 0x177   :  { %1962 = vmatmul.mubr.bf16.gmra.mxu1 %v2630_v30 }
 0x1ff   :  { %v2683_v54 = vpop.f32.mrf.mxu1 }
 0x200   :  { %v795_v30 = vmul.f32 %v2683_v54, %v2683_v54 }
 0x201   :  { %v2685_v18 = vpop.f32.mrf.mxu1 }
 0x202   :  { %v793_v44 = vmul.f32 %v2685_v18, %v2685_v18 }
 0x203   :  { %v2687_v59 = vpop.f32.mrf.mxu1 }
 0x204   :  { %v796_v45 = vmul.f32 %v2687_v59, %v2687_v59 }
 0x205   :  { %v2689_v19 = vpop.f32.mrf.mxu1 }
 0x206   :  { %v755_v35 = vadd.f32 %v2689_v19, %v2685_v18  ;;  %v794_v4 = vmul.f32 %v2689_v19, %v2689_v19 }
 0x207   :  { %v2697_v37 = vpop.f32.mrf.mxu1 }
 0x208   :  { %v756_v12 = vadd.f32 %v2683_v54, %v755_v35  ;;  %v825_v39 = vadd.f32 %v794_v4, %v793_v44  ;;  %v799_v61 = vmul.f32 %v2697_v37, %v2697_v37 }
 0x209   :  { %v2702_v41 = vpop.f32.mrf.mxu1 }
 0x20a   :  { %v826_v58 = vadd.f32 %v825_v39, %v795_v30  ;;  %v757_v32 = vadd.f32 %v2687_v59, %v756_v12  ;;  %v797_v46 = vmul.f32 %v2702_v41, %v2702_v41  ;;  %v2093_v12 = vld [vmem:[%s3436_s3] sm:$0xff]  }
 0x20b   :  { %v2710_v40 = vpop.f32.mrf.mxu1  ;;  %1979 = vmatprep.subr.bf16.mxu0 %v2093_v12 }
 0x20c   :  { %v758_v60 = vadd.f32 %v757_v32, %v2702_v41  ;;  %v827_v52 = vadd.f32 %v826_v58, %v796_v45  ;;  %v800_v62 = vmul.f32 %v2710_v40, %v2710_v40  ;;  %1980 = vmatpush3.bf16.msra.mxu0 %v2093_v12 }
 0x20d   :  { %v2715_v1 = vpop.f32.mrf.mxu1 }
 0x20e   :  { %v828_v50 = vadd.f32 %v827_v52, %v797_v46  ;;  %v759_v51 = vadd.f32 %v758_v60, %v2715_v1  ;;  %v798_v53 = vmul.f32 %v2715_v1, %v2715_v1 }
 0x20f   :  { %v2723_v55 = vpop.f32.mrf.mxu1 }
 0x210   :  { %v760_v0 = vadd.f32 %v2697_v37, %v759_v51  ;;  %v829_v8 = vadd.f32 %v828_v50, %v798_v53  ;;  %v803_v17 = vmul.f32 %v2723_v55, %v2723_v55 }
 0x211   :  { %v2728_v48 = vpop.f32.mrf.mxu1 }
 0x212   :  { %v830_v20 = vadd.f32 %v829_v8, %v799_v61  ;;  %v761_v11 = vadd.f32 %v2710_v40, %v760_v0  ;;  %v801_v28 = vmul.f32 %v2728_v48, %v2728_v48 }
 0x213   :  { %v2736_v22 = vpop.f32.mrf.mxu1 }
 0x214   :  { %v762_v2 = vadd.f32 %v761_v11, %v2728_v48  ;;  %v831_v49 = vadd.f32 %v830_v20, %v800_v62  ;;  %v804_v21 = vmul.f32 %v2736_v22, %v2736_v22 }
 0x215   :  { %v2741_v3 = vpop.f32.mrf.mxu1 }
 0x216   :  { %v832_v63 = vadd.f32 %v831_v49, %v801_v28  ;;  %v763_v9 = vadd.f32 %v762_v2, %v2741_v3  ;;  %v802_v10 = vmul.f32 %v2741_v3, %v2741_v3 }
 0x217   :  { %v2749_v6 = vpop.f32.mrf.mxu1 }
 0x218   :  { %v764_v13 = vadd.f32 %v2723_v55, %v763_v9  ;;  %v833_v15 = vadd.f32 %v832_v63, %v802_v10  ;;  %v807_v44 = vmul.f32 %v2749_v6, %v2749_v6 }
 0x219   :  { %v2754_v33 = vpop.f32.mrf.mxu1 }
 0x21a   :  { %v834_v23 = vadd.f32 %v833_v15, %v803_v17  ;;  %v765_v25 = vadd.f32 %v2736_v22, %v764_v13  ;;  %v805_v31 = vmul.f32 %v2754_v33, %v2754_v33 }
 0x21b   :  { %v2765_v29 = vpop.f32.mrf.mxu1 }
 0x21c   :  { %v766_v16 = vadd.f32 %v765_v25, %v2754_v33  ;;  %v835_v24 = vadd.f32 %v834_v23, %v804_v21  ;;  %v808_v39 = vmul.f32 %v2765_v29, %v2765_v29 }
 0x21d   :  { %v2770_v27 = vpop.f32.mrf.mxu1 }
 0x21e   :  { %v836_v34 = vadd.f32 %v835_v24, %v805_v31  ;;  %v767_v57 = vadd.f32 %v766_v16, %v2770_v27  ;;  %v806_v7 = vmul.f32 %v2770_v27, %v2770_v27 }
 0x21f   :  { %v2778_v36 = vpop.f32.mrf.mxu1 }
 0x220   :  { %v768_v35 = vadd.f32 %v2749_v6, %v767_v57  ;;  %v837_v4 = vadd.f32 %v836_v34, %v806_v7  ;;  %v811_v61 = vmul.f32 %v2778_v36, %v2778_v36 }
 0x221   :  { %v2783_v30 = vpop.f32.mrf.mxu1 }
 0x222   :  { %v838_v42 = vadd.f32 %v837_v4, %v807_v44  ;;  %v769_v45 = vadd.f32 %v2765_v29, %v768_v35  ;;  %v809_v60 = vmul.f32 %v2783_v30, %v2783_v30 }
 0x223   :  { %v2791_v58 = vpop.f32.mrf.mxu1 }
 0x224   :  { %v770_v32 = vadd.f32 %v769_v45, %v2783_v30  ;;  %v839_v46 = vadd.f32 %v838_v42, %v808_v39  ;;  %v812_v62 = vmul.f32 %v2791_v58, %v2791_v58 }
 0x225   :  { %v2796_v52 = vpop.f32.mrf.mxu1 }
 0x226   :  { %v840_v47 = vadd.f32 %v839_v46, %v809_v60  ;;  %v771_v50 = vadd.f32 %v770_v32, %v2796_v52  ;;  %v810_v51 = vmul.f32 %v2796_v52, %v2796_v52 }
 0x227   :  { %v2801_v53 = vpop.f32.mrf.mxu1 }
 0x228   :  { %v772_v0 = vadd.f32 %v2778_v36, %v771_v50  ;;  %v841_v8 = vadd.f32 %v840_v47, %v810_v51  ;;  %v815_v15 = vmul.f32 %v2801_v53, %v2801_v53 }
 0x229   :  { %v2806_v56 = vpop.f32.mrf.mxu1 }
 0x22a   :  { %v842_v20 = vadd.f32 %v841_v8, %v811_v61  ;;  %v773_v11 = vadd.f32 %v2791_v58, %v772_v0  ;;  %v813_v49 = vmul.f32 %v2806_v56, %v2806_v56 }
 0x22b   :  { %v2811_v2 = vpop.f32.mrf.mxu1 }
 0x22c   :  { %v774_v28 = vadd.f32 %v773_v11, %v2806_v56  ;;  %v843_v5 = vadd.f32 %v842_v20, %v812_v62  ;;  %v816_v25 = vmul.f32 %v2811_v2, %v2811_v2 }
 0x22d   :  { %v2816_v63 = vpop.f32.mrf.mxu1 }
 0x22e   :  { %v844_v9 = vadd.f32 %v843_v5, %v813_v49  ;;  %v775_v10 = vadd.f32 %v774_v28, %v2816_v63  ;;  %v814_v17 = vmul.f32 %v2816_v63, %v2816_v63 }
 0x22f   :  { %v2821_v13 = vpop.f32.mrf.mxu1 }
 0x230   :  { %v776_v43 = vadd.f32 %v2801_v53, %v775_v10  ;;  %v845_v21 = vadd.f32 %v844_v9, %v814_v17  ;;  %v819_v12 = vmul.f32 %v2821_v13, %v2821_v13 }
 0x231   :  { %v2826_v23 = vpop.f32.mrf.mxu1 }
 0x232   :  { %v846_v26 = vadd.f32 %v845_v21, %v815_v15  ;;  %v777_v16 = vadd.f32 %v2811_v2, %v776_v43  ;;  %v817_v38 = vmul.f32 %v2826_v23, %v2826_v23 }
 0x233   :  { %v2831_v31 = vpop.f32.mrf.mxu1 }
 0x234   :  { %v778_v24 = vadd.f32 %v777_v16, %v2826_v23  ;;  %v847_v34 = vadd.f32 %v846_v26, %v816_v25  ;;  %v820_v32 = vmul.f32 %v2831_v31, %v2831_v31 }
 0x235   :  { %v2836_v57 = vpop.f32.mrf.mxu1 }
 0x236   :  { %v848_v7 = vadd.f32 %v847_v34, %v817_v38  ;;  %v779_v44 = vadd.f32 %v778_v24, %v2836_v57  ;;  %v818_v35 = vmul.f32 %v2836_v57, %v2836_v57 }
 0x237   :  { %v2841_v4 = vpop.f32.mrf.mxu1 }
 0x238   :  { %v780_v39 = vadd.f32 %v2821_v13, %v779_v44  ;;  %v849_v42 = vadd.f32 %v848_v7, %v818_v35  ;;  %v823_v11 = vmul.f32 %v2841_v4, %v2841_v4 }
 0x239   :  { %v2846_v45 = vpop.f32.mrf.mxu1 }
 0x23a   :  { %v850_v60 = vadd.f32 %v849_v42, %v819_v12  ;;  %v781_v46 = vadd.f32 %v2831_v31, %v780_v39  ;;  %v821_v51 = vmul.f32 %v2846_v45, %v2846_v45 }
 0x23b   :  { %v2851_v47 = vpop.f32.mrf.mxu1 }
 0x23c   :  { %v782_v50 = vadd.f32 %v781_v46, %v2846_v45  ;;  %v851_v61 = vadd.f32 %v850_v60, %v820_v32  ;;  %v824_v5 = vmul.f32 %v2851_v47, %v2851_v47 }
 0x23d   :  { %v2856_v0 = vpop.f32.mrf.mxu1 }
 0x23e   :  { %v852_v8 = vadd.f32 %v851_v61, %v821_v51  ;;  %v783_v62 = vadd.f32 %v782_v50, %v2856_v0  ;;  %v822_v20 = vmul.f32 %v2856_v0, %v2856_v0  ;;  %v753_v50 = vld [vmem:[%s3435_s5 + $0x2] sm:$0x1] }
 0x240   :  { %v784_v28 = vadd.f32 %v2841_v4, %v783_v62  ;;  %v853_v49 = vadd.f32 %v852_v8, %v822_v20  ;;  %v754_v62 = vld [vmem:[%s3435_s5 + $0x3] sm:$0x1] }
 0x242   :  { %v785_v9 = vadd.f32 %v2851_v47, %v784_v28  ;;  %v854_v10 = vadd.f32 %v853_v49, %v823_v11 }
 0x244   :  { %v786_v17 = vrot.slane %v785_v9, 4  ;;  %v855_v15 = vadd.f32 %v854_v10, %v824_v5 }
 0x246   :  { %v787_v43 = vadd.f32 %v786_v17, %v785_v9  ;;  %v856_v21 = vrot.slane %v855_v15, 4 }
 0x248   :  { %v788_v25 = vrot.slane %v787_v43, 2  ;;  %v857_v26 = vadd.f32 %v856_v21, %v855_v15 }
 0x24a   :  { %v789_v16 = vadd.f32 %v788_v25, %v787_v43  ;;  %v858_v24 = vrot.slane %v857_v26, 2 }
 0x24c   :  { %v790_v38 = vrot.slane %v789_v16, 1  ;;  %v859_v34 = vadd.f32 %v858_v24, %v857_v26 }
 0x24e   :  { %v791_v7 = vadd.f32 %v790_v38, %v789_v16  ;;  %v860_v44 = vrot.slane %v859_v34, 1 }
 0x250   :  { %v792_v35 = vmul.f32 0.00390625, %v791_v7  ;;  %v861_v12 = vadd.f32 %v860_v44, %v859_v34 }
 0x252   :  { %v862_v39 = vmul.f32 0.00390625, %v861_v12  ;;  %v863_v42 = vmul.f32 %v792_v35, %v792_v35 }
 0x254   :  { %v864_v32 = vsub.f32 %v862_v39, %v863_v42 }
 0x256   :  { %v865_v60 = vmax.f32 %v864_v32, 0.0 }
 0x258   :  { %v866_v46 = vadd.f32 1e-05, %v865_v60 }
 0x25a   :  { %2104 = vrsqrt.f32 %v866_v46 }
 0x267   :  { %v2105_v51 = vpop.eup %2104 }
 0x268   :  { %v868_v61 = vmul.f32 %v2105_v51, %v753_v50 }
 0x26a   :  { %v869_v8 = vmul.f32 %v868_v61, %v792_v35  ;;  %v2874_v11 = vrot.slane %v868_v61, %v2576_v14 }
 0x26c   :  { %v870_v20 = vsub.f32 %v754_v62, %v869_v8  ;;  %v875_v49 = vmul.f32 %v2874_v11, %v2685_v18  ;;  %v876_v5 = vmul.f32 %v2874_v11, %v2689_v19  ;;  %v877_v9 = vmul.f32 %v2683_v54, %v2874_v11 }
 0x26d   :  { %v878_v17 = vmul.f32 %v2687_v59, %v2874_v11  ;;  %v879_v43 = vmul.f32 %v2874_v11, %v2702_v41  ;;  %v880_v18 = vmul.f32 %v2874_v11, %v2715_v1  ;;  %v881_v54 = vmul.f32 %v2697_v37, %v2874_v11 }
 0x26e   :  { %v2877_v28 = vrot.slane %v870_v20, %v2576_v14  ;;  %v882_v26 = vmul.f32 %v2710_v40, %v2874_v11  ;;  %v883_v41 = vmul.f32 %v2874_v11, %v2728_v48  ;;  %v884_v16 = vmul.f32 %v2874_v11, %v2741_v3 }
 0x26f   :  { %v885_v40 = vmul.f32 %v2723_v55, %v2874_v11  ;;  %v886_v48 = vmul.f32 %v2736_v22, %v2874_v11  ;;  %v887_v3 = vmul.f32 %v2874_v11, %v2754_v33  ;;  %v888_v7 = vmul.f32 %v2874_v11, %v2770_v27 }
 0x270   :  { %v911_v10 = vadd.f32 %v2877_v28, %v875_v49  ;;  %v912_v15 = vadd.f32 %v2877_v28, %v876_v5  ;;  %v913_v21 = vadd.f32 %v2877_v28, %v877_v9  ;;  %v914_v19 = vadd.f32 %v2877_v28, %v878_v17 }
 0x271   :  { %v915_v25 = vadd.f32 %v2877_v28, %v879_v43  ;;  %v916_v59 = vadd.f32 %v2877_v28, %v880_v18  ;;  %v917_v1 = vadd.f32 %v2877_v28, %v881_v54  ;;  %v918_v24 = vadd.f32 %v2877_v28, %v882_v26 }
 0x272   :  { %2106 = vtanh.f32 %v911_v10  ;;  %v919_v37 = vadd.f32 %v2877_v28, %v883_v41  ;;  %v920_v38 = vadd.f32 %v2877_v28, %v884_v16  ;;  %v921_v34 = vadd.f32 %v2877_v28, %v885_v40 }
 0x273   :  { %2108 = vtanh.f32 %v912_v15  ;;  %v922_v44 = vadd.f32 %v2877_v28, %v886_v48  ;;  %v923_v12 = vadd.f32 %v2877_v28, %v887_v3  ;;  %v924_v55 = vadd.f32 %v2877_v28, %v888_v7 }
 0x274   :  { %2110 = vtanh.f32 %v913_v21  ;;  %v889_v33 = vmul.f32 %v2749_v6, %v2874_v11  ;;  %v890_v50 = vmul.f32 %v2765_v29, %v2874_v11  ;;  %v891_v51 = vmul.f32 %v2874_v11, %v2783_v30 }
 0x275   :  { %2112 = vtanh.f32 %v914_v19  ;;  %v892_v20 = vmul.f32 %v2874_v11, %v2796_v52  ;;  %v905_v30 = vmul.f32 %v2841_v4, %v2874_v11  ;;  %v906_v17 = vmul.f32 %v2851_v47, %v2874_v11 }
 0x276   :  { %2114 = vtanh.f32 %v915_v25  ;;  %v925_v61 = vadd.f32 %v2877_v28, %v889_v33  ;;  %v926_v6 = vadd.f32 %v2877_v28, %v890_v50  ;;  %v927_v5 = vadd.f32 %v2877_v28, %v891_v51 }
 0x277   :  { %2116 = vtanh.f32 %v916_v59  ;;  %v928_v29 = vadd.f32 %v2877_v28, %v892_v20  ;;  %v893_v52 = vmul.f32 %v2778_v36, %v2874_v11  ;;  %v941_v15 = vadd.f32 %v2877_v28, %v905_v30  ;;  %v2094_v30 = vld [vmem:[%s3437_s4 + $0x38] sm:$0xff]  }
 0x278   :  { %2118 = vtanh.f32 %v917_v1  ;;  %v894_v21 = vmul.f32 %v2791_v58, %v2874_v11  ;;  %v942_v18 = vadd.f32 %v2877_v28, %v906_v17  ;;  %v895_v4 = vmul.f32 %v2874_v11, %v2806_v56  ;;  %2061 = vmatprep.subr.bf16.mxu1 %v2094_v30  ;;  %2013 = vmatprep.subr.bf16.mxu0 %v2094_v30  ;;  %v2095_v17 = vld [vmem:[%s3437_s4 + $0x30] sm:$0xff]  }
 0x279   :  { %2120 = vtanh.f32 %v918_v24  ;;  %v929_v47 = vadd.f32 %v2877_v28, %v893_v52  ;;  %v896_v36 = vmul.f32 %v2874_v11, %v2816_v63  ;;  %v897_v56 = vmul.f32 %v2801_v53, %v2874_v11  ;;  %2069 = vmatpush3.bf16.msra.mxu1 %v2094_v30  ;;  %v2096_v52 = vld [vmem:[%s3437_s4 + $0x28] sm:$0xff]  }
 0x27a   :  { %2122 = vtanh.f32 %v919_v37  ;;  %v930_v54 = vadd.f32 %v2877_v28, %v894_v21  ;;  %v931_v58 = vadd.f32 %v2877_v28, %v895_v4  ;;  %v898_v63 = vmul.f32 %v2811_v2, %v2874_v11  ;;  %2062 = vmatprep.subr.bf16.mxu1 %v2095_v17  ;;  %v2098_v21 = vld [vmem:[%s3437_s4 + $0x18] sm:$0xff]  }
 0x27b   :  { %2124 = vtanh.f32 %v920_v38  ;;  %v932_v41 = vadd.f32 %v2877_v28, %v896_v36  ;;  %v899_v37 = vmul.f32 %v2874_v11, %v2826_v23  ;;  %v933_v38 = vadd.f32 %v2877_v28, %v897_v56 }
 0x27c   :  { %2126 = vtanh.f32 %v921_v34  ;;  %v900_v48 = vmul.f32 %v2874_v11, %v2836_v57  ;;  %v934_v3 = vadd.f32 %v2877_v28, %v898_v63  ;;  %v904_v23 = vmul.f32 %v2874_v11, %v2856_v0 }
 0x27d   :  { %2128 = vtanh.f32 %v922_v44  ;;  %v935_v34 = vadd.f32 %v2877_v28, %v899_v37  ;;  %v901_v57 = vmul.f32 %v2821_v13, %v2874_v11  ;;  %2070 = vmatpush3.bf16.msra.mxu1 %v2095_v17 }
 0x27e   :  { %2130 = vtanh.f32 %v923_v12  ;;  %v936_v2 = vadd.f32 %v2877_v28, %v900_v48  ;;  %2063 = vmatprep.subr.bf16.mxu1 %v2096_v52 }
 0x27f   :  { %v2107_v35 = vpop.eup %2106  ;;  %2132 = vtanh.f32 %v924_v55  ;;  %v937_v0 = vadd.f32 %v2877_v28, %v901_v57 }
 0x280   :  { %v2109_v39 = vpop.eup %2108  ;;  %2134 = vtanh.f32 %v925_v61 }
 0x281   :  { %v2111_v42 = vpop.eup %2110  ;;  %v975_v22 = vpack.c.bf16 %v2109_v39, %v2107_v35  ;;  %2136 = vtanh.f32 %v926_v6  ;;  %2071 = vmatpush3.bf16.msra.mxu1 %v2096_v52 }
 0x282   :  { %v2113_v32 = vpop.eup %2112  ;;  %2138 = vtanh.f32 %v927_v5 }
 0x283   :  { %v2115_v60 = vpop.eup %2114  ;;  %1981 = vmatprep.mubr.bf16.mxu0 %v975_v22  ;;  %v976_v27 = vpack.c.bf16 %v2113_v32, %v2111_v42  ;;  %2140 = vtanh.f32 %v928_v29  ;;  %v940_v42 = vadd.f32 %v2877_v28, %v904_v23  ;;  %v902_v22 = vmul.f32 %v2831_v31, %v2874_v11 }
 0x284   :  { %v2117_v46 = vpop.eup %2116  ;;  %2142 = vtanh.f32 %v941_v15  ;;  %v2097_v15 = vld [vmem:[%s3437_s4 + $0x20] sm:$0xff]  }
 0x285   :  { %1982 = vmatmul.mubr.bf16.vlgmr.msra.gmra.mxu0 %v976_v27  ;;  %v977_v8 = vpack.c.bf16 %v2117_v46, %v2115_v60  ;;  %v2119_v62 = vpop.eup %2118  ;;  %2144 = vtanh.f32 %v942_v18  ;;  %v903_v60 = vmul.f32 %v2874_v11, %v2846_v45  ;;  %v938_v13 = vadd.f32 %v2877_v28, %v902_v22  ;;  %2064 = vmatprep.subr.bf16.mxu1 %v2097_v15 }
 0x286   :  { %v2121_v49 = vpop.eup %2120  ;;  %2146 = vtanh.f32 %v929_v47  ;;  %2014 = vmatpush3.bf16.msra.mxu0 %v2094_v30  ;;  %2072 = vmatpush3.bf16.msra.mxu1 %v2097_v15 }
 0x287   :  { %1985 = vmatprep.mubr.bf16.mxu0 %v977_v8  ;;  %v2123_v9 = vpop.eup %2122  ;;  %v978_v43 = vpack.c.bf16 %v2121_v49, %v2119_v62  ;;  %2148 = vtanh.f32 %v930_v54  ;;  %v939_v50 = vadd.f32 %v2877_v28, %v903_v60  ;;  %2015 = vmatprep.subr.bf16.mxu0 %v2095_v17 }
 0x288   :  { %v2125_v10 = vpop.eup %2124  ;;  %2150 = vtanh.f32 %v931_v58  ;;  %2065 = vmatprep.subr.bf16.mxu1 %v2098_v21 }
 0x289   :  { %v979_v19 = vpack.c.bf16 %v2125_v10, %v2123_v9  ;;  %v2127_v25 = vpop.eup %2126  ;;  %2152 = vtanh.f32 %v932_v41 }
 0x28a   :  { %v2129_v59 = vpop.eup %2128  ;;  %2154 = vtanh.f32 %v933_v38  ;;  %2016 = vmatpush3.bf16.msra.mxu0 %v2095_v17  ;;  %2073 = vmatpush3.bf16.msra.mxu1 %v2098_v21 }
 0x28b   :  { %v2131_v26 = vpop.eup %2130  ;;  %v980_v16 = vpack.c.bf16 %v2129_v59, %v2127_v25  ;;  %2156 = vtanh.f32 %v934_v3  ;;  %2017 = vmatprep.subr.bf16.mxu0 %v2096_v52  ;;  %v2100_v25 = vld [vmem:[%s3437_s4 + $0x8] sm:$0xff]  }
 0x28c   :  { %v2133_v1 = vpop.eup %2132  ;;  %2158 = vtanh.f32 %v935_v34 }
 0x28d   :  { %1986 = vmatmul.mubr.bf16.gmra.mxu0 %v978_v43  ;;  %v981_v24 = vpack.c.bf16 %v2133_v1, %v2131_v26  ;;  %v2135_v40 = vpop.eup %2134  ;;  %2160 = vtanh.f32 %v936_v2 }
 0x28e   :  { %1989 = vmatprep.mubr.bf16.mxu0 %v979_v19  ;;  %v2137_v53 = vpop.eup %2136  ;;  %2162 = vtanh.f32 %v940_v42  ;;  %2018 = vmatpush3.bf16.msra.mxu0 %v2096_v52  ;;  %v2099_v19 = vld [vmem:[%s3437_s4 + $0x10] sm:$0xff]  }
 0x28f   :  { %v2139_v7 = vpop.eup %2138  ;;  %v982_v35 = vpack.c.bf16 %v2137_v53, %v2135_v40  ;;  %2164 = vtanh.f32 %v937_v0  ;;  %2019 = vmatprep.subr.bf16.mxu0 %v2097_v15  ;;  %2066 = vmatprep.subr.bf16.mxu1 %v2099_v19 }
 0x290   :  { %v2141_v44 = vpop.eup %2140  ;;  %2166 = vtanh.f32 %v938_v13  ;;  %2074 = vmatpush3.bf16.msra.mxu1 %v2099_v19 }
 0x291   :  { %v2143_v12 = vpop.eup %2142  ;;  %v983_v39 = vpack.c.bf16 %v2141_v44, %v2139_v7  ;;  %2168 = vtanh.f32 %v939_v50  ;;  %2067 = vmatprep.subr.bf16.mxu1 %v2100_v25 }
 0x292   :  { %v2145_v55 = vpop.eup %2144  ;;  %2020 = vmatpush3.bf16.msra.mxu0 %v2097_v15 }
 0x293   :  { %v2147_v32 = vpop.eup %2146  ;;  %v990_v33 = vpack.c.bf16 %v2145_v55, %v2143_v12  ;;  %2021 = vmatprep.subr.bf16.mxu0 %v2098_v21 }
 0x294   :  { %v2149_v27 = vpop.eup %2148  ;;  %2075 = vmatpush3.bf16.msra.mxu1 %v2100_v25 }
 0x295   :  { %1990 = vmatmul.mubr.bf16.gmra.mxu0 %v980_v16  ;;  %v2151_v46 = vpop.eup %2150  ;;  %v984_v31 = vpack.c.bf16 %v2149_v27, %v2147_v32  ;;  %v2101_v16 = vld [vmem:[%s3437_s4] sm:$0xff]  }
 0x296   :  { %1993 = vmatprep.mubr.bf16.mxu0 %v981_v24  ;;  %v2153_v51 = vpop.eup %2152  ;;  %2022 = vmatpush3.bf16.msra.mxu0 %v2098_v21 }
 0x297   :  { %v985_v61 = vpack.c.bf16 %v2153_v51, %v2151_v46  ;;  %v2155_v8 = vpop.eup %2154  ;;  %2023 = vmatprep.subr.bf16.mxu0 %v2099_v19  ;;  %2068 = vmatprep.subr.bf16.mxu1 %v2101_v16 }
 0x298   :  { %v2157_v45 = vpop.eup %2156  ;;  %2076 = vmatpush3.bf16.msra.mxu1 %v2101_v16 }
 0x299   :  { %v2159_v11 = vpop.eup %2158  ;;  %v986_v20 = vpack.c.bf16 %v2157_v45, %v2155_v8 }
 0x29a   :  { %v2161_v62 = vpop.eup %2160  ;;  %2024 = vmatpush3.bf16.msra.mxu0 %v2099_v19 }
 0x29b   :  { %v987_v6 = vpack.c.bf16 %v2161_v62, %v2159_v11  ;;  %v2163_v49 = vpop.eup %2162  ;;  %2025 = vmatprep.subr.bf16.mxu0 %v2100_v25 }
 0x29c   :  { %v2165_v5 = vpop.eup %2164 }
 0x29d   :  { %1994 = vmatmul.mubr.bf16.gmra.mxu0 %v982_v35  ;;  %v2167_v28 = vpop.eup %2166 }
 0x29e   :  { %1997 = vmatprep.mubr.bf16.mxu0 %v983_v39  ;;  %v2169_v9 = vpop.eup %2168  ;;  %v988_v29 = vpack.c.bf16 %v2167_v28, %v2165_v5  ;;  %2026 = vmatpush3.bf16.msra.mxu0 %v2100_v25 }
 0x29f   :  { %v989_v10 = vpack.c.bf16 %v2163_v49, %v2169_v9  ;;  %2027 = vmatprep.subr.bf16.mxu0 %v2101_v16 }
 0x2a2   :  { %2028 = vmatpush3.bf16.msra.mxu0 %v2101_v16 }
 0x2a5   :  { %1998 = vmatmul.mubr.bf16.gmra.mxu0 %v984_v31 }
 0x2a6   :  { %2001 = vmatprep.mubr.bf16.mxu0 %v985_v61 }
 0x2ad   :  { %2002 = vmatmul.mubr.bf16.gmra.mxu0 %v986_v20 }
 0x2ae   :  { %2005 = vmatprep.mubr.bf16.mxu0 %v987_v6 }
 0x2b5   :  { %2006 = vmatmul.mubr.bf16.gmra.mxu0 %v988_v29 }
 0x2b6   :  { %2009 = vmatprep.mubr.bf16.mxu0 %v989_v10 }
 0x2bd   :  { %2010 = vmatmul.mubr.bf16.gmra.mxu0 %v990_v33 }
 0x345   :  { %v2987_v43 = vpop.f32.mrf.mxu0 }
 0x346   :  { %v1258_v26 = vmul.f32 %v2987_v43, %v2987_v43 }
 0x347   :  { %v2992_v18 = vpop.f32.mrf.mxu0 }
 0x348   :  { %v1256_v36 = vmul.f32 %v2992_v18, %v2992_v18 }
 0x349   :  { %v2997_v4 = vpop.f32.mrf.mxu0 }
 0x34a   :  { %v1259_v63 = vmul.f32 %v2997_v4, %v2997_v4 }
 0x34b   :  { %v2999_v47 = vpop.f32.mrf.mxu0 }
 0x34c   :  { %v1218_v54 = vadd.f32 %v2999_v47, %v2992_v18  ;;  %v1257_v59 = vmul.f32 %v2999_v47, %v2999_v47 }
 0x34d   :  { %v3010_v58 = vpop.f32.mrf.mxu0 }
 0x34e   :  { %v1219_v41 = vadd.f32 %v2987_v43, %v1218_v54  ;;  %v1288_v1 = vadd.f32 %v1257_v59, %v1256_v36  ;;  %v1262_v23 = vmul.f32 %v3010_v58, %v3010_v58 }
 0x34f   :  { %v3015_v56 = vpop.f32.mrf.mxu0 }
 0x350   :  { %v1289_v24 = vadd.f32 %v1288_v1, %v1258_v26  ;;  %v1220_v37 = vadd.f32 %v2997_v4, %v1219_v41  ;;  %v1260_v48 = vmul.f32 %v3015_v56, %v3015_v56 }
 0x351   :  { %v3023_v38 = vpop.f32.mrf.mxu0 }
 0x352   :  { %v1221_v40 = vadd.f32 %v1220_v37, %v3015_v56  ;;  %v1290_v3 = vadd.f32 %v1289_v24, %v1259_v63  ;;  %v1263_v39 = vmul.f32 %v3023_v38, %v3023_v38 }
 0x353   :  { %v3028_v53 = vpop.f32.mrf.mxu0 }
 0x354   :  { %v1291_v34 = vadd.f32 %v1290_v3, %v1260_v48  ;;  %v1222_v7 = vadd.f32 %v1221_v40, %v3028_v53  ;;  %v1261_v2 = vmul.f32 %v3028_v53, %v3028_v53 }
 0x355   :  { %v3033_v44 = vpop.f32.mrf.mxu0 }
 0x356   :  { %v1223_v35 = vadd.f32 %v3010_v58, %v1222_v7  ;;  %v1292_v12 = vadd.f32 %v1291_v34, %v1261_v2  ;;  %v1266_v51 = vmul.f32 %v3033_v44, %v3033_v44 }
 0x357   :  { %v3038_v57 = vpop.f32.mrf.mxu0 }
 0x358   :  { %v1293_v55 = vadd.f32 %v1292_v12, %v1262_v23  ;;  %v1224_v42 = vadd.f32 %v3023_v38, %v1223_v35  ;;  %v1264_v60 = vmul.f32 %v3038_v57, %v3038_v57 }
 0x359   :  { %v3043_v22 = vpop.f32.mrf.mxu0 }
 0x35a   :  { %v1225_v32 = vadd.f32 %v1224_v42, %v3038_v57  ;;  %v1294_v0 = vadd.f32 %v1293_v55, %v1263_v39  ;;  %v1267_v45 = vmul.f32 %v3043_v22, %v3043_v22 }
 0x35b   :  { %v3048_v33 = vpop.f32.mrf.mxu0 }
 0x35c   :  { %v1295_v27 = vadd.f32 %v1294_v0, %v1264_v60  ;;  %v1226_v13 = vadd.f32 %v1225_v32, %v3048_v33  ;;  %v1265_v46 = vmul.f32 %v3048_v33, %v3048_v33 }
 0x35d   :  { %v3053_v50 = vpop.f32.mrf.mxu0 }
 0x35e   :  { %v1227_v31 = vadd.f32 %v3033_v44, %v1226_v13  ;;  %v1296_v61 = vadd.f32 %v1295_v27, %v1265_v46  ;;  %v1270_v17 = vmul.f32 %v3053_v50, %v3053_v50 }
 0x35f   :  { %v3058_v8 = vpop.f32.mrf.mxu0 }
 0x360   :  { %v1297_v11 = vadd.f32 %v1296_v61, %v1266_v51  ;;  %v1228_v62 = vadd.f32 %v3043_v22, %v1227_v31  ;;  %v1268_v49 = vmul.f32 %v3058_v8, %v3058_v8 }
 0x361   :  { %v3063_v20 = vpop.f32.mrf.mxu0 }
 0x362   :  { %v1229_v6 = vadd.f32 %v1228_v62, %v3058_v8  ;;  %v1298_v5 = vadd.f32 %v1297_v11, %v1267_v45  ;;  %v1271_v19 = vmul.f32 %v3063_v20, %v3063_v20 }
 0x363   :  { %v3068_v28 = vpop.f32.mrf.mxu0 }
 0x364   :  { %v1299_v9 = vadd.f32 %v1298_v5, %v1268_v49  ;;  %v1230_v29 = vadd.f32 %v1229_v6, %v3068_v28  ;;  %v1269_v10 = vmul.f32 %v3068_v28, %v3068_v28 }
 0x365   :  { %v3073_v30 = vpop.f32.mrf.mxu0 }
 0x366   :  { %v1231_v52 = vadd.f32 %v3053_v50, %v1230_v29  ;;  %v1300_v15 = vadd.f32 %v1299_v9, %v1269_v10  ;;  %v1274_v40 = vmul.f32 %v3073_v30, %v3073_v30 }
 0x367   :  { %v3078_v21 = vpop.f32.mrf.mxu0 }
 0x368   :  { %v1301_v25 = vadd.f32 %v1300_v15, %v1270_v17  ;;  %v1232_v36 = vadd.f32 %v3063_v20, %v1231_v52  ;;  %v1272_v26 = vmul.f32 %v3078_v21, %v3078_v21 }
 0x369   :  { %v3083_v54 = vpop.f32.mrf.mxu0 }
 0x36a   :  { %v1233_v59 = vadd.f32 %v1232_v36, %v3078_v21  ;;  %v1302_v41 = vadd.f32 %v1301_v25, %v1271_v19  ;;  %v1275_v7 = vmul.f32 %v3083_v54, %v3083_v54 }
 0x36b   :  { %v3088_v1 = vpop.f32.mrf.mxu0 }
 0x36c   :  { %v1303_v16 = vadd.f32 %v1302_v41, %v1272_v26  ;;  %v1234_v63 = vadd.f32 %v1233_v59, %v3088_v1  ;;  %v1273_v24 = vmul.f32 %v3088_v1, %v3088_v1 }
 0x36d   :  { %v3093_v37 = vpop.f32.mrf.mxu0 }
 0x36e   :  { %v1235_v48 = vadd.f32 %v3073_v30, %v1234_v63  ;;  %v1304_v3 = vadd.f32 %v1303_v16, %v1273_v24  ;;  %v1278_v13 = vmul.f32 %v3093_v37, %v3093_v37 }
 0x36f   :  { %v3098_v34 = vpop.f32.mrf.mxu0 }
 0x370   :  { %v1305_v2 = vadd.f32 %v1304_v3, %v1274_v40  ;;  %v1236_v23 = vadd.f32 %v3083_v54, %v1235_v48  ;;  %v1276_v39 = vmul.f32 %v3098_v34, %v3098_v34 }
 0x371   :  { %v3103_v35 = vpop.f32.mrf.mxu0 }
 0x372   :  { %v1237_v12 = vadd.f32 %v1236_v23, %v3098_v34  ;;  %v1306_v55 = vadd.f32 %v1305_v2, %v1275_v7  ;;  %v1279_v61 = vmul.f32 %v3103_v35, %v3103_v35 }
 0x373   :  { %v3108_v42 = vpop.f32.mrf.mxu0 }
 0x374   :  { %v1307_v32 = vadd.f32 %v1306_v55, %v1276_v39  ;;  %v1238_v60 = vadd.f32 %v1237_v12, %v3108_v42  ;;  %v1277_v0 = vmul.f32 %v3108_v42, %v3108_v42 }
 0x375   :  { %v3113_v27 = vpop.f32.mrf.mxu0 }
 0x376   :  { %v1239_v46 = vadd.f32 %v3093_v37, %v1238_v60  ;;  %v1308_v51 = vadd.f32 %v1307_v32, %v1277_v0  ;;  %v1282_v15 = vmul.f32 %v3113_v27, %v3113_v27 }
 0x377   :  { %v3118_v31 = vpop.f32.mrf.mxu0 }
 0x378   :  { %v1309_v45 = vadd.f32 %v1308_v51, %v1278_v13  ;;  %v1240_v11 = vadd.f32 %v3103_v35, %v1239_v46  ;;  %v1280_v49 = vmul.f32 %v3118_v31, %v3118_v31 }
 0x379   :  { %v3123_v62 = vpop.f32.mrf.mxu0 }
 0x37a   :  { %v1241_v6 = vadd.f32 %v1240_v11, %v3118_v31  ;;  %v1310_v5 = vadd.f32 %v1309_v45, %v1279_v61  ;;  %v1283_v59 = vmul.f32 %v3123_v62, %v3123_v62 }
 0x37b   :  { %v3128_v9 = vpop.f32.mrf.mxu0 }
 0x37c   :  { %v1311_v29 = vadd.f32 %v1310_v5, %v1280_v49  ;;  %v1242_v10 = vadd.f32 %v1241_v6, %v3128_v9  ;;  %v1281_v17 = vmul.f32 %v3128_v9, %v3128_v9 }
 0x37d   :  { %v3133_v52 = vpop.f32.mrf.mxu0 }
 0x37e   :  { %v1243_v19 = vadd.f32 %v3113_v27, %v1242_v10  ;;  %v1312_v25 = vadd.f32 %v1311_v29, %v1281_v17  ;;  %v1286_v23 = vmul.f32 %v3133_v52, %v3133_v52 }
 0x37f   :  { %v3138_v36 = vpop.f32.mrf.mxu0 }
 0x380   :  { %v1313_v26 = vadd.f32 %v1312_v25, %v1282_v15  ;;  %v1244_v41 = vadd.f32 %v3123_v62, %v1243_v19  ;;  %v1284_v24 = vmul.f32 %v3138_v36, %v3138_v36 }
 0x381   :  { %v3143_v16 = vpop.f32.mrf.mxu0 }
 0x382   :  { %v1245_v63 = vadd.f32 %v1244_v41, %v3138_v36  ;;  %v1314_v40 = vadd.f32 %v1313_v26, %v1283_v59  ;;  %v1287_v55 = vmul.f32 %v3143_v16, %v3143_v16 }
 0x383   :  { %v3148_v48 = vpop.f32.mrf.mxu0 }
 0x384   :  { %v1315_v3 = vadd.f32 %v1314_v40, %v1284_v24  ;;  %v1246_v7 = vadd.f32 %v1245_v63, %v3148_v48  ;;  %v1285_v2 = vmul.f32 %v3148_v48, %v3148_v48  ;;  %v1216_v63 = vld [vmem:[%s3435_s5 + $0x4] sm:$0x1] }
 0x386   :  { %v1247_v12 = vadd.f32 %v3133_v52, %v1246_v7  ;;  %v1316_v39 = vadd.f32 %v1315_v3, %v1285_v2  ;;  %v1217_v7 = vld [vmem:[%s3435_s5 + $0x5] sm:$0x1] }
 0x388   :  { %v1248_v32 = vadd.f32 %v3143_v16, %v1247_v12  ;;  %v1317_v60 = vadd.f32 %v1316_v39, %v1286_v23 }
 0x38a   :  { %v1249_v0 = vrot.slane %v1248_v32, 4  ;;  %v1318_v13 = vadd.f32 %v1317_v60, %v1287_v55 }
 0x38c   :  { %v1250_v46 = vadd.f32 %v1249_v0, %v1248_v32  ;;  %v1319_v51 = vrot.slane %v1318_v13, 4 }
 0x38e   :  { %v1251_v61 = vrot.slane %v1250_v46, 2  ;;  %v1320_v45 = vadd.f32 %v1319_v51, %v1318_v13 }
 0x390   :  { %v1252_v11 = vadd.f32 %v1251_v61, %v1250_v46  ;;  %v1321_v6 = vrot.slane %v1320_v45, 2 }
 0x392   :  { %v1253_v49 = vrot.slane %v1252_v11, 1  ;;  %v1322_v5 = vadd.f32 %v1321_v6, %v1320_v45 }
 0x394   :  { %v1254_v29 = vadd.f32 %v1253_v49, %v1252_v11  ;;  %v1323_v10 = vrot.slane %v1322_v5, 1 }
 0x396   :  { %v1255_v17 = vmul.f32 0.00390625, %v1254_v29  ;;  %v1324_v15 = vadd.f32 %v1323_v10, %v1322_v5 }
 0x398   :  { %v1325_v19 = vmul.f32 0.00390625, %v1324_v15  ;;  %v1326_v25 = vmul.f32 %v1255_v17, %v1255_v17 }
 0x39a   :  { %v1327_v59 = vsub.f32 %v1325_v19, %v1326_v25 }
 0x39c   :  { %v1328_v26 = vmax.f32 %v1327_v59, 0.0 }
 0x39e   :  { %v1329_v41 = vadd.f32 1e-05, %v1328_v26 }
 0x3a0   :  { %2170 = vrsqrt.f32 %v1329_v41 }
 0x3ad   :  { %v2171_v24 = vpop.eup %2170 }
 0x3ae   :  { %v1331_v40 = vmul.f32 %v2171_v24, %v1216_v63 }
 0x3b0   :  { %v1332_v3 = vmul.f32 %v1331_v40, %v1255_v17  ;;  %v3166_v23 = vrot.slane %v1331_v40, %v2576_v14 }
 0x3b2   :  { %v1333_v2 = vsub.f32 %v1217_v7, %v1332_v3  ;;  %v1338_v39 = vmul.f32 %v3166_v23, %v2992_v18  ;;  %v1339_v55 = vmul.f32 %v3166_v23, %v2999_v47  ;;  %v1340_v32 = vmul.f32 %v2987_v43, %v3166_v23 }
 0x3b3   :  { %v1341_v60 = vmul.f32 %v2997_v4, %v3166_v23  ;;  %v1342_v0 = vmul.f32 %v3166_v23, %v3015_v56  ;;  %v1343_v13 = vmul.f32 %v3166_v23, %v3028_v53  ;;  %v1345_v18 = vmul.f32 %v3023_v38, %v3166_v23 }
 0x3b4   :  { %v3169_v12 = vrot.slane %v1333_v2, %v2576_v14  ;;  %v1344_v14 = vmul.f32 %v3010_v58, %v3166_v23  ;;  %v1346_v47 = vmul.f32 %v3166_v23, %v3038_v57  ;;  %v1347_v43 = vmul.f32 %v3166_v23, %v3048_v33 }
 0x3b5   :  { %v1348_v45 = vmul.f32 %v3033_v44, %v3166_v23  ;;  %v1349_v59 = vmul.f32 %v3043_v22, %v3166_v23  ;;  %v1350_v24 = vmul.f32 %v3166_v23, %v3058_v8  ;;  %v1351_v44 = vmul.f32 %v3166_v23, %v3068_v28 }
 0x3b6   :  { %v1376_v4 = vadd.f32 %v3169_v12, %v1340_v32  ;;  %v1377_v46 = vadd.f32 %v3169_v12, %v1341_v60  ;;  %v1374_v56 = vadd.f32 %v3169_v12, %v1338_v39  ;;  %v1375_v53 = vadd.f32 %v3169_v12, %v1339_v55 }
 0x3b7   :  { %v1380_v51 = vadd.f32 %v3169_v12, %v1344_v14  ;;  %v1381_v58 = vadd.f32 %v3169_v12, %v1345_v18  ;;  %v1378_v38 = vadd.f32 %v3169_v12, %v1342_v0  ;;  %v1379_v61 = vadd.f32 %v3169_v12, %v1343_v13 }
 0x3b8   :  { %v1382_v57 = vadd.f32 %v3169_v12, %v1346_v47  ;;  %v1383_v33 = vadd.f32 %v3169_v12, %v1347_v43  ;;  %v1408_v11 = vmax.f32 %v1376_v4, 0.0  ;;  %v1409_v6 = vmax.f32 %v1377_v46, 0.0 }
 0x3b9   :  { %v1412_v49 = vmax.f32 %v1380_v51, 0.0  ;;  %v1413_v5 = vmax.f32 %v1381_v58, 0.0  ;;  %v1406_v29 = vmax.f32 %v1374_v56, 0.0  ;;  %v1407_v10 = vmax.f32 %v1375_v53, 0.0 }
 0x3ba   :  { %v1439_v17 = vpack.c.bf16 %v1409_v6, %v1408_v11  ;;  %v1410_v15 = vmax.f32 %v1378_v38, 0.0  ;;  %v1411_v19 = vmax.f32 %v1379_v61, 0.0  ;;  %v1414_v25 = vmax.f32 %v1382_v57, 0.0 }
 0x3bb   :  { %v1441_v26 = vpack.c.bf16 %v1413_v5, %v1412_v49  ;;  %v1438_v41 = vpack.c.bf16 %v1407_v10, %v1406_v29  ;;  %v1415_v63 = vmax.f32 %v1383_v33, 0.0  ;;  %v1368_v3 = vmul.f32 %v3133_v52, %v3166_v23 }
 0x3bc   :  { %v1440_v40 = vpack.c.bf16 %v1411_v19, %v1410_v15  ;;  %v1369_v7 = vmul.f32 %v3143_v16, %v3166_v23  ;;  %v1384_v2 = vadd.f32 %v3169_v12, %v1348_v45  ;;  %v1385_v22 = vadd.f32 %v3169_v12, %v1349_v59 }
 0x3bd   :  { %2029 = vmatprep.mubr.bf16.mxu0 %v1438_v41  ;;  %v1386_v39 = vadd.f32 %v3169_v12, %v1350_v24  ;;  %v1387_v55 = vadd.f32 %v3169_v12, %v1351_v44  ;;  %v1442_v8 = vpack.c.bf16 %v1415_v63, %v1414_v25  ;;  %v1404_v28 = vadd.f32 %v3169_v12, %v1368_v3 }
 0x3be   :  { %2033 = vmatprep.mubr.bf16.mxu1 %v1440_v40  ;;  %2030 = vmatmul.mubr.bf16.vlgmr.msra.gmra.mxu0 %v1439_v17  ;;  %v1405_v32 = vadd.f32 %v3169_v12, %v1369_v7  ;;  %v1416_v52 = vmax.f32 %v1384_v2, 0.0  ;;  %v1417_v16 = vmax.f32 %v1385_v22, 0.0  ;;  %v1352_v13 = vmul.f32 %v3053_v50, %v3166_v23 }
 0x3bf   :  { %2034 = vmatmul.mubr.bf16.vlgmr.msra.gmra.mxu1 %v1441_v26  ;;  %v1418_v60 = vmax.f32 %v1386_v39, 0.0  ;;  %v1419_v0 = vmax.f32 %v1387_v55, 0.0  ;;  %v1353_v14 = vmul.f32 %v3063_v20, %v3166_v23  ;;  %v1436_v18 = vmax.f32 %v1404_v28, 0.0 }
 0x3c0   :  { %2037 = vmatprep.mubr.bf16.mxu1 %v1442_v8  ;;  %v1437_v47 = vmax.f32 %v1405_v32, 0.0  ;;  %v1354_v43 = vmul.f32 %v3166_v23, %v3078_v21  ;;  %v1355_v4 = vmul.f32 %v3166_v23, %v3088_v1  ;;  %v1388_v46 = vadd.f32 %v3169_v12, %v1352_v13 }
 0x3c1   :  { %v1389_v56 = vadd.f32 %v3169_v12, %v1353_v14  ;;  %v1443_v53 = vpack.c.bf16 %v1417_v16, %v1416_v52  ;;  %v1444_v38 = vpack.c.bf16 %v1419_v0, %v1418_v60  ;;  %v1356_v1 = vmul.f32 %v3073_v30, %v3166_v23 }
 0x3c2   :  { %v1453_v51 = vpack.c.bf16 %v1437_v47, %v1436_v18  ;;  %v1390_v58 = vadd.f32 %v3169_v12, %v1354_v43  ;;  %v1391_v50 = vadd.f32 %v3169_v12, %v1355_v4  ;;  %v1420_v20 = vmax.f32 %v1388_v46, 0.0 }
 0x3c3   :  { %v1421_v61 = vmax.f32 %v1389_v56, 0.0  ;;  %v1357_v33 = vmul.f32 %v3083_v54, %v3166_v23  ;;  %v1358_v45 = vmul.f32 %v3166_v23, %v3098_v34  ;;  %v1359_v11 = vmul.f32 %v3166_v23, %v3108_v42 }
 0x3c4   :  { %v1422_v57 = vmax.f32 %v1390_v58, 0.0  ;;  %v1423_v21 = vmax.f32 %v1391_v50, 0.0  ;;  %v1392_v6 = vadd.f32 %v3169_v12, %v1356_v1  ;;  %v1360_v34 = vmul.f32 %v3093_v37, %v3166_v23 }
 0x3c5   :  { %v1393_v49 = vadd.f32 %v3169_v12, %v1357_v33  ;;  %v1445_v5 = vpack.c.bf16 %v1421_v61, %v1420_v20  ;;  %v1394_v29 = vadd.f32 %v3169_v12, %v1358_v45  ;;  %v1395_v10 = vadd.f32 %v3169_v12, %v1359_v11 }
 0x3c6   :  { %v1446_v17 = vpack.c.bf16 %v1423_v21, %v1422_v57  ;;  %v1424_v30 = vmax.f32 %v1392_v6, 0.0  ;;  %v1361_v42 = vmul.f32 %v3103_v35, %v3166_v23  ;;  %v1362_v25 = vmul.f32 %v3166_v23, %v3118_v31 }
 0x3c7   :  { %2038 = vmatmul.mubr.bf16.gmra.mxu1 %v1443_v53  ;;  %v1425_v54 = vmax.f32 %v1393_v49, 0.0  ;;  %v1426_v15 = vmax.f32 %v1394_v29, 0.0  ;;  %v1427_v19 = vmax.f32 %v1395_v10, 0.0  ;;  %v1363_v59 = vmul.f32 %v3166_v23, %v3128_v9 }
 0x3c8   :  { %2041 = vmatprep.mubr.bf16.mxu1 %v1444_v38  ;;  %v1396_v26 = vadd.f32 %v3169_v12, %v1360_v34  ;;  %v1397_v41 = vadd.f32 %v3169_v12, %v1361_v42  ;;  %v1398_v24 = vadd.f32 %v3169_v12, %v1362_v25  ;;  %v1364_v31 = vmul.f32 %v3113_v27, %v3166_v23 }
 0x3c9   :  { %v1447_v63 = vpack.c.bf16 %v1425_v54, %v1424_v30  ;;  %v1399_v44 = vadd.f32 %v3169_v12, %v1363_v59  ;;  %v1448_v40 = vpack.c.bf16 %v1427_v19, %v1426_v15  ;;  %v1365_v9 = vmul.f32 %v3123_v62, %v3166_v23 }
 0x3ca   :  { %v1428_v37 = vmax.f32 %v1396_v26, 0.0  ;;  %v1429_v35 = vmax.f32 %v1397_v41, 0.0  ;;  %v1430_v3 = vmax.f32 %v1398_v24, 0.0  ;;  %v1367_v2 = vmul.f32 %v3166_v23, %v3148_v48 }
 0x3cb   :  { %v1431_v7 = vmax.f32 %v1399_v44, 0.0  ;;  %v1366_v22 = vmul.f32 %v3166_v23, %v3138_v36  ;;  %v1400_v39 = vadd.f32 %v3169_v12, %v1364_v31  ;;  %v1401_v55 = vadd.f32 %v3169_v12, %v1365_v9  ;;  %v3270_v36 = vld [vmem:[%s3435_s5 + $0x6] ss:$0 sm:$0xff] }
 0x3cc   :  { %v1449_v8 = vpack.c.bf16 %v1429_v35, %v1428_v37  ;;  %v1403_v28 = vadd.f32 %v3169_v12, %v1367_v2 }
 0x3cd   :  { %v1402_v32 = vadd.f32 %v3169_v12, %v1366_v22  ;;  %v1450_v52 = vpack.c.bf16 %v1431_v7, %v1430_v3  ;;  %v1432_v27 = vmax.f32 %v1400_v39, 0.0  ;;  %v1433_v62 = vmax.f32 %v1401_v55, 0.0 }
 0x3ce   :  { %v1435_v60 = vmax.f32 %v1403_v28, 0.0 }
 0x3cf   :  { %2042 = vmatmul.mubr.bf16.gmra.mxu1 %v1445_v5  ;;  %v1434_v16 = vmax.f32 %v1402_v32, 0.0  ;;  %v1451_v48 = vpack.c.bf16 %v1433_v62, %v1432_v27 }
 0x3d0   :  { %2045 = vmatprep.mubr.bf16.mxu1 %v1446_v17 }
 0x3d1   :  { %v1452_v0 = vpack.c.bf16 %v1435_v60, %v1434_v16 }
 0x3d7   :  { %2046 = vmatmul.mubr.bf16.gmra.mxu1 %v1447_v63 }
 0x3d8   :  { %2049 = vmatprep.mubr.bf16.mxu1 %v1448_v40 }
 0x3df   :  { %2050 = vmatmul.mubr.bf16.gmra.mxu1 %v1449_v8 }
 0x3e0   :  { %2053 = vmatprep.mubr.bf16.mxu1 %v1450_v52 }
 0x3e7   :  { %2054 = vmatmul.mubr.bf16.gmra.mxu1 %v1451_v48 }
 0x3e8   :  { %2057 = vmatprep.mubr.bf16.mxu1 %v1452_v0 }
 0x3ef   :  { %2058 = vmatmul.mubr.bf16.gmra.mxu1 %v1453_v51 }
 0x47e   :  { %v2031_v23 = vpop.f32.mrf.mxu0 }
 0x47f   :  { %v1566_v12 = vadd.f32 %v2031_v23, %v3270_v36  ;;  %v2035_v13 = vpop.f32.mrf.mxu1 }
 0x480   :  { %v1582_v14 = vadd.f32 %v2035_v13, %v3270_v36  ;;  %v1557_v18 = vpop.f32.mrf.mxu0 }
 0x481   :  { %2172 = vtanh.f32 %v1566_v12  ;;  %v1558_v47 = vadd.f32 %v3270_v36, %v1557_v18  ;;  %v1573_v43 = vpop.f32.mrf.mxu1 }
 0x482   :  { %2174 = vtanh.f32 %v1582_v14  ;;  %v1574_v4 = vadd.f32 %v3270_v36, %v1573_v43  ;;  %v2032_v46 = vpop.f32.mrf.mxu0 }
 0x483   :  { %2176 = vtanh.f32 %v1558_v47  ;;  %v1569_v56 = vadd.f32 %v2032_v46, %v3270_v36  ;;  %v2036_v53 = vpop.f32.mrf.mxu1 }
 0x484   :  { %2178 = vtanh.f32 %v1574_v4  ;;  %v1585_v51 = vadd.f32 %v2036_v53, %v3270_v36  ;;  %v1560_v58 = vpop.f32.mrf.mxu0 }
 0x485   :  { %2180 = vtanh.f32 %v1569_v56  ;;  %v1561_v50 = vadd.f32 %v3270_v36, %v1560_v58  ;;  %v1576_v38 = vpop.f32.mrf.mxu1 }
 0x486   :  { %2182 = vtanh.f32 %v1585_v51  ;;  %v1577_v20 = vadd.f32 %v3270_v36, %v1576_v38 }
 0x487   :  { %2184 = vtanh.f32 %v1561_v50  ;;  %v2039_v61 = vpop.f32.mrf.mxu1 }
 0x488   :  { %2186 = vtanh.f32 %v1577_v20  ;;  %v1598_v57 = vadd.f32 %v2039_v61, %v3270_v36 }
 0x489   :  { %v1589_v21 = vpop.f32.mrf.mxu1 }
 0x48a   :  { %2188 = vtanh.f32 %v1598_v57  ;;  %v1590_v1 = vadd.f32 %v3270_v36, %v1589_v21 }
 0x48b   :  { %v2040_v33 = vpop.f32.mrf.mxu1 }
 0x48c   :  { %2190 = vtanh.f32 %v1590_v1  ;;  %v1601_v45 = vadd.f32 %v2040_v33, %v3270_v36 }
 0x48d   :  { %v1592_v11 = vpop.f32.mrf.mxu1 }
 0x48e   :  { %v2173_v6 = vpop.eup %2172  ;;  %2192 = vtanh.f32 %v1601_v45  ;;  %v1593_v49 = vadd.f32 %v3270_v36, %v1592_v11 }
 0x48f   :  { %v2175_v5 = vpop.eup %2174  ;;  %1718 = vst.msk [vmem:[%s3438_s6 + $0x10] sm:$0xff] %vm80_vm0, %v2173_v6  ;;  %v2043_v29 = vpop.f32.mrf.mxu1 }
 0x490   :  { %v2177_v10 = vpop.eup %2176  ;;  %1722 = vst.msk [vmem:[%s3438_s6 + $0x30] sm:$0xff] %vm80_vm0, %v2175_v5  ;;  %2194 = vtanh.f32 %v1593_v49  ;;  %v1614_v17 = vadd.f32 %v2043_v29, %v3270_v36 }
 0x491   :  { %v2179_v30 = vpop.eup %2178  ;;  %1716 = vst.msk [vmem:[%s3438_s6] sm:$0xff] %vm80_vm0, %v2177_v10  ;;  %v1605_v54 = vpop.f32.mrf.mxu1 }
 0x492   :  { %v2181_v15 = vpop.eup %2180  ;;  %1720 = vst.msk [vmem:[%s3438_s6 + $0x20] sm:$0xff] %vm80_vm0, %v2179_v30  ;;  %2196 = vtanh.f32 %v1614_v17  ;;  %v1606_v19 = vadd.f32 %v3270_v36, %v1605_v54 }
 0x493   :  { %v2183_v34 = vpop.eup %2182  ;;  %1719 = vst.msk [vmem:[%s3438_s6 + $0x18] sm:$0xff] %vm80_vm0, %v2181_v15  ;;  %v2044_v42 = vpop.f32.mrf.mxu1 }
 0x494   :  { %v2185_v25 = vpop.eup %2184  ;;  %1723 = vst.msk [vmem:[%s3438_s6 + $0x38] sm:$0xff] %vm80_vm0, %v2183_v34  ;;  %2198 = vtanh.f32 %v1606_v19  ;;  %v1617_v59 = vadd.f32 %v2044_v42, %v3270_v36 }
 0x495   :  { %v2187_v26 = vpop.eup %2186  ;;  %1717 = vst.msk [vmem:[%s3438_s6 + $0x8] sm:$0xff] %vm80_vm0, %v2185_v25  ;;  %v1608_v41 = vpop.f32.mrf.mxu1 }
 0x496   :  { %1721 = vst.msk [vmem:[%s3438_s6 + $0x28] sm:$0xff] %vm80_vm0, %v2187_v26  ;;  %2200 = vtanh.f32 %v1617_v59  ;;  %v1609_v63 = vadd.f32 %v3270_v36, %v1608_v41 }
 0x497   :  { %v2189_v24 = vpop.eup %2188  ;;  %v2047_v44 = vpop.f32.mrf.mxu1 }
 0x498   :  { %1726 = vst.msk [vmem:[%s3438_s6 + $0x50] sm:$0xff] %vm80_vm0, %v2189_v24  ;;  %2202 = vtanh.f32 %v1609_v63  ;;  %v1630_v40 = vadd.f32 %v2047_v44, %v3270_v36 }
 0x499   :  { %v2191_v37 = vpop.eup %2190  ;;  %v1621_v35 = vpop.f32.mrf.mxu1 }
 0x49a   :  { %1724 = vst.msk [vmem:[%s3438_s6 + $0x40] sm:$0xff] %vm80_vm0, %v2191_v37  ;;  %2204 = vtanh.f32 %v1630_v40  ;;  %v1622_v3 = vadd.f32 %v3270_v36, %v1621_v35 }
 0x49b   :  { %v2193_v7 = vpop.eup %2192  ;;  %v2048_v31 = vpop.f32.mrf.mxu1 }
 0x49c   :  { %1727 = vst.msk [vmem:[%s3438_s6 + $0x58] sm:$0xff] %vm80_vm0, %v2193_v7  ;;  %2206 = vtanh.f32 %v1622_v3  ;;  %v1633_v9 = vadd.f32 %v2048_v31, %v3270_v36 }
 0x49d   :  { %v2195_v2 = vpop.eup %2194  ;;  %v1624_v22 = vpop.f32.mrf.mxu1 }
 0x49e   :  { %1725 = vst.msk [vmem:[%s3438_s6 + $0x48] sm:$0xff] %vm80_vm0, %v2195_v2  ;;  %2208 = vtanh.f32 %v1633_v9  ;;  %v1625_v39 = vadd.f32 %v3270_v36, %v1624_v22 }
 0x49f   :  { %v2197_v55 = vpop.eup %2196  ;;  %v2051_v8 = vpop.f32.mrf.mxu1 }
 0x4a0   :  { %1730 = vst.msk [vmem:[%s3438_s6 + $0x70] sm:$0xff] %vm80_vm0, %v2197_v55  ;;  %2210 = vtanh.f32 %v1625_v39  ;;  %v1646_v28 = vadd.f32 %v2051_v8, %v3270_v36 }
 0x4a1   :  { %v2199_v32 = vpop.eup %2198  ;;  %v1637_v52 = vpop.f32.mrf.mxu1 }
 0x4a2   :  { %1728 = vst.msk [vmem:[%s3438_s6 + $0x60] sm:$0xff] %vm80_vm0, %v2199_v32  ;;  %2212 = vtanh.f32 %v1646_v28  ;;  %v1638_v27 = vadd.f32 %v3270_v36, %v1637_v52 }
 0x4a3   :  { %v2201_v62 = vpop.eup %2200  ;;  %v2052_v16 = vpop.f32.mrf.mxu1 }
 0x4a4   :  { %1731 = vst.msk [vmem:[%s3438_s6 + $0x78] sm:$0xff] %vm80_vm0, %v2201_v62  ;;  %2214 = vtanh.f32 %v1638_v27  ;;  %v1649_v60 = vadd.f32 %v2052_v16, %v3270_v36 }
 0x4a5   :  { %v2203_v48 = vpop.eup %2202  ;;  %v1640_v0 = vpop.f32.mrf.mxu1 }
 0x4a6   :  { %1729 = vst.msk [vmem:[%s3438_s6 + $0x68] sm:$0xff] %vm80_vm0, %v2203_v48  ;;  %2216 = vtanh.f32 %v1649_v60  ;;  %v1641_v23 = vadd.f32 %v3270_v36, %v1640_v0 }
 0x4a7   :  { %v2205_v12 = vpop.eup %2204  ;;  %v2055_v13 = vpop.f32.mrf.mxu1 }
 0x4a8   :  { %1734 = vst.msk [vmem:[%s3438_s6 + $0x90] sm:$0xff] %vm80_vm0, %v2205_v12  ;;  %2218 = vtanh.f32 %v1641_v23  ;;  %v1662_v14 = vadd.f32 %v2055_v13, %v3270_v36 }
 0x4a9   :  { %v2207_v18 = vpop.eup %2206  ;;  %v1653_v47 = vpop.f32.mrf.mxu1 }
 0x4aa   :  { %1732 = vst.msk [vmem:[%s3438_s6 + $0x80] sm:$0xff] %vm80_vm0, %v2207_v18  ;;  %2220 = vtanh.f32 %v1662_v14  ;;  %v1654_v43 = vadd.f32 %v3270_v36, %v1653_v47 }
 0x4ab   :  { %v2209_v4 = vpop.eup %2208  ;;  %v2056_v46 = vpop.f32.mrf.mxu1 }
 0x4ac   :  { %1735 = vst.msk [vmem:[%s3438_s6 + $0x98] sm:$0xff] %vm80_vm0, %v2209_v4  ;;  %2222 = vtanh.f32 %v1654_v43  ;;  %v1665_v56 = vadd.f32 %v2056_v46, %v3270_v36 }
 0x4ad   :  { %v2211_v53 = vpop.eup %2210  ;;  %v1656_v51 = vpop.f32.mrf.mxu1 }
 0x4ae   :  { %1733 = vst.msk [vmem:[%s3438_s6 + $0x88] sm:$0xff] %vm80_vm0, %v2211_v53  ;;  %2224 = vtanh.f32 %v1665_v56  ;;  %v1657_v58 = vadd.f32 %v3270_v36, %v1656_v51 }
 0x4af   :  { %v2213_v50 = vpop.eup %2212  ;;  %v2059_v38 = vpop.f32.mrf.mxu1 }
 0x4b0   :  { %1738 = vst.msk [vmem:[%s3438_s6 + $0xb0] sm:$0xff] %vm80_vm0, %v2213_v50  ;;  %2226 = vtanh.f32 %v1657_v58  ;;  %v1678_v20 = vadd.f32 %v2059_v38, %v3270_v36 }
 0x4b1   :  { %v2215_v61 = vpop.eup %2214  ;;  %v1669_v57 = vpop.f32.mrf.mxu1 }
 0x4b2   :  { %1736 = vst.msk [vmem:[%s3438_s6 + $0xa0] sm:$0xff] %vm80_vm0, %v2215_v61  ;;  %2228 = vtanh.f32 %v1678_v20  ;;  %v1670_v21 = vadd.f32 %v3270_v36, %v1669_v57 }
 0x4b3   :  { %v2217_v1 = vpop.eup %2216  ;;  %v2060_v33 = vpop.f32.mrf.mxu1 }
 0x4b4   :  { %1739 = vst.msk [vmem:[%s3438_s6 + $0xb8] sm:$0xff] %vm80_vm0, %v2217_v1  ;;  %2230 = vtanh.f32 %v1670_v21  ;;  %v1681_v45 = vadd.f32 %v2060_v33, %v3270_v36 }
 0x4b5   :  { %v2219_v11 = vpop.eup %2218  ;;  %v1672_v6 = vpop.f32.mrf.mxu1 }
 0x4b6   :  { %1737 = vst.msk [vmem:[%s3438_s6 + $0xa8] sm:$0xff] %vm80_vm0, %v2219_v11  ;;  %2232 = vtanh.f32 %v1681_v45  ;;  %v1673_v49 = vadd.f32 %v3270_v36, %v1672_v6 }
 0x4b7   :  { %v2221_v5 = vpop.eup %2220 }
 0x4b8   :  { %1742 = vst.msk [vmem:[%s3438_s6 + $0xd0] sm:$0xff] %vm80_vm0, %v2221_v5  ;;  %2234 = vtanh.f32 %v1673_v49 }
 0x4b9   :  { %v2223_v29 = vpop.eup %2222 }
 0x4ba   :  { %1740 = vst.msk [vmem:[%s3438_s6 + $0xc0] sm:$0xff] %vm80_vm0, %v2223_v29 }
 0x4bb   :  { %v2225_v10 = vpop.eup %2224 }
 0x4bc   :  { %1743 = vst.msk [vmem:[%s3438_s6 + $0xd8] sm:$0xff] %vm80_vm0, %v2225_v10 }
 0x4bd   :  { %v2227_v36 = vpop.eup %2226 }
 0x4be   :  { %1741 = vst.msk [vmem:[%s3438_s6 + $0xc8] sm:$0xff] %vm80_vm0, %v2227_v36 }
 0x4bf   :  { %v2229_v17 = vpop.eup %2228 }
 0x4c0   :  { %1746 = vst.msk [vmem:[%s3438_s6 + $0xf0] sm:$0xff] %vm80_vm0, %v2229_v17 }
 0x4c1   :  { %v2231_v30 = vpop.eup %2230 }
 0x4c2   :  { %1744 = vst.msk [vmem:[%s3438_s6 + $0xe0] sm:$0xff] %vm80_vm0, %v2231_v30 }
 0x4c3   :  { %v2233_v54 = vpop.eup %2232 }
 0x4c4   :  { %1747 = vst.msk [vmem:[%s3438_s6 + $0xf8] sm:$0xff] %vm80_vm0, %v2233_v54 }
 0x4c5   :  { %v2235_v15 = vpop.eup %2234 }
 0x4c6   :  { %1745 = vst.msk [vmem:[%s3438_s6 + $0xe8] sm:$0xff] %vm80_vm0, %v2235_v15 }

</bundles_post_ra>
